<compile_context>
chip_gen: v7x
topology: tpu7x:2x2x1
jax: 0.10.0
libtpu: 0.0.40
codegen_flags: <defaults>
</compile_context>

<pallas_src>
import functools

import jax
import jax.numpy as jnp
import numpy as np
from jax import lax
from jax.experimental import pallas as pl
from jax.experimental.pallas import tpu as pltpu


# ------------------------------ Fused kernel --------------------------------


def _bottleneck_kernel(x_hbm, x_blk, w1_ref, w2_ref, w3_ref,
                       b1_ref, b2_ref, b3_ref,
                       o_ref, halo, sems, *, H, W, TH, Cin, P, Cout):
    n = pl.program_id(0)
    r = pl.program_id(1)
    nr = pl.num_programs(1)
    r0 = r * TH
    L = (TH + 2) * W
    bf = jnp.bfloat16

    # ---- start the tiny halo-row DMAs (top / bottom, clamped at the edges) ---
    # The bulk TH-row tile (x_blk) is already in VMEM via Pallas' own pipeline,
    # so these two 1-row copies are the only exposed DMAs and they are hidden
    # behind the conv1 matmul on the middle rows below.
    top = jnp.maximum(r0 - 1, 0)
    bot = jnp.minimum(r0 + TH, H - 1)
    cp_top = pltpu.make_async_copy(x_hbm.at[n, pl.ds(top, 1)],
                                   halo.at[pl.ds(0, 1)], sems.at[0])
    cp_bot = pltpu.make_async_copy(x_hbm.at[n, pl.ds(bot, 1)],
                                   halo.at[pl.ds(1, 1)], sems.at[1])
    cp_top.start()
    cp_bot.start()

    # ---- conv1 (1x1, BN-folded) + bias + relu on the middle rows (f32 acc) ---
    xm = x_blk[...].reshape(TH * W, Cin)                       # f32 (residual src)
    y1m = jnp.dot(xm.astype(bf), w1_ref[...],
                  preferred_element_type=jnp.float32)
    y1m = jnp.maximum(y1m + b1_ref[...], 0.0)                  # (TH*W, P)

    # ---- conv1 on the two halo rows; zero them when outside the image -------
    cp_top.wait()
    cp_bot.wait()
    xh = halo[...].reshape(2 * W, Cin).astype(bf)
    y1h = jnp.dot(xh, w1_ref[...], preferred_element_type=jnp.float32)
    y1h = jnp.maximum(y1h + b1_ref[...], 0.0)
    t_ok = (r > 0).astype(jnp.float32)
    b_ok = (r < nr - 1).astype(jnp.float32)
    y1t = y1h[:W] * t_ok                                       # zero-pad row h-1
    y1b = y1h[W:] * b_ok                                       # zero-pad row h+1
    y1 = jnp.concatenate([y1t, y1m, y1b], axis=0)              # (L, P) f32

    # ---- conv2 (3x3, pad 1, BN-folded) as ONE fat MXU matmul ----------------
    # Column-shifted taps via XLU roll + edge masks; the 9 taps are stacked
    # along channels so conv2 is a single (TH*W, 9P) x (9P, P) dot.
    col = lax.broadcasted_iota(jnp.int32, (L, 1), 0) % W
    left = jnp.where(col != 0, pltpu.roll(y1, 1, 0), 0.0)          # reads w - 1
    right = jnp.where(col != W - 1, pltpu.roll(y1, L - 1, 0), 0.0)  # reads w + 1
    taps = (left, y1, right)                                   # kw = 0, 1, 2
    lhs = jnp.concatenate(
        [taps[kw][kh * W:(kh + TH) * W] for kh in range(3) for kw in range(3)],
        axis=1).astype(bf)                                     # (TH*W, 9P) bf16
    y2 = jnp.dot(lhs, w2_ref[...], preferred_element_type=jnp.float32)
    y2 = jnp.maximum(y2 + b2_ref[...], 0.0)                    # (TH*W, P) f32

    # ---- conv3 (1x1, BN-folded) + bias + residual (f32) + relu --------------
    y3 = jnp.dot(y2.astype(bf), w3_ref[...],
                 preferred_element_type=jnp.float32)           # (TH*W, Cout)
    y3 = y3 + b3_ref[...] + xm                                 # residual in f32
    o_ref[...] = jnp.maximum(y3, 0.0).reshape(1, TH, W, Cout).astype(o_ref.dtype)


# --------------------------- Param preparation -------------------------------


def fold_params(params):
    """Fold BN scale into conv weights (bf16); keep biases in f32."""
    f32, bf = jnp.float32, jnp.bfloat16
    s1, b1 = params["s1"].astype(f32), params["b1"].astype(f32)
    s2, b2 = params["s2"].astype(f32), params["b2"].astype(f32)
    s3, b3 = params["s3"].astype(f32), params["b3"].astype(f32)
    w1f = (params["w1"].astype(f32) * s1[None, :]).astype(bf)              # (Cin, P)
    w2f = (params["w2"].astype(f32) * s2[None, None, None, :]).astype(bf)  # (3,3,P,P)
    w3f = (params["w3"].astype(f32) * s3[None, :]).astype(bf)              # (P, Cout)
    return w1f, w2f, w3f, b1, b2, b3


# -------------------------------- Wrapper ------------------------------------


def bottleneck_forward(x_nhwc, params, *, row_tile=32):
    """Fused Bottleneck forward (stride=1, downsample=None). NHWC in / NHWC out."""
    x = x_nhwc.astype(jnp.float32)
    N, H, W, Cin = x.shape
    P = params["w1"].shape[1]
    Cout = params["w3"].shape[1]
    assert Cin == Cout, "downsample=None requires inplanes == planes * 4"
    TH = min(row_tile, H)
    assert H % TH == 0, "H must be divisible by the row tile"
    assert W % 8 == 0, "W must be a multiple of 8 (sublane alignment)"

    w1f, w2f, w3f, b1, b2, b3 = fold_params(params)
    w2r = w2f.reshape(9 * P, P)            # (kh, kw, cin) stacked along K
    b1 = b1.reshape(1, P)
    b2 = b2.reshape(1, P)
    b3 = b3.reshape(1, Cout)

    kernel = functools.partial(_bottleneck_kernel, H=H, W=W, TH=TH,
                               Cin=Cin, P=P, Cout=Cout)

    return pl.pallas_call(
        kernel,
        out_shape=jax.ShapeDtypeStruct((N, H, W, Cout), jnp.float32),
        grid=(N, H // TH),
        in_specs=[
            pl.BlockSpec(memory_space=pl.ANY),                        # x in HBM (halo rows)
            pl.BlockSpec((1, TH, W, Cin), lambda n, r: (n, r, 0, 0)),  # pipelined x tile
            pl.BlockSpec((Cin, P), lambda n, r: (0, 0)),
            pl.BlockSpec((9 * P, P), lambda n, r: (0, 0)),
            pl.BlockSpec((P, Cout), lambda n, r: (0, 0)),
            pl.BlockSpec((1, P), lambda n, r: (0, 0)),
            pl.BlockSpec((1, P), lambda n, r: (0, 0)),
            pl.BlockSpec((1, Cout), lambda n, r: (0, 0)),
        ],
        out_specs=pl.BlockSpec((1, TH, W, Cout), lambda n, r: (n, r, 0, 0)),
        scratch_shapes=[
            pltpu.VMEM((2, W, Cin), jnp.float32),     # top/bottom halo rows
            pltpu.SemaphoreType.DMA((2,)),
        ],
        compiler_params=pltpu.CompilerParams(
            dimension_semantics=("parallel", "parallel")),
    )(x, x, w1f, w2r, w3f, b1, b2, b3)


# ----------------------- Reference (pure JAX, same precision) ----------------


def reference_forward(x_nhwc, params):
    """lax reference mirroring the kernel's precision (folded bf16 weights, f32 acc)."""
    bf = jnp.bfloat16
    x = x_nhwc.astype(jnp.float32)
    Cin = x.shape[-1]
    P = params["w1"].shape[1]
    Cout = params["w3"].shape[1]
    w1f, w2f, w3f, b1, b2, b3 = fold_params(params)
    dn = ("NHWC", "HWIO", "NHWC")

    def conv(inp, w, pad):
        return lax.conv_general_dilated(
            inp.astype(bf), w, (1, 1), pad, dimension_numbers=dn,
            preferred_element_type=jnp.float32)

    out = jax.nn.relu(conv(x, w1f.reshape(1, 1, Cin, P), "VALID")
                      + b1.reshape(1, 1, 1, -1))
    out = jax.nn.relu(conv(out, w2f, [(1, 1), (1, 1)]) + b2.reshape(1, 1, 1, -1))
    out = conv(out, w3f.reshape(1, 1, P, Cout), "VALID") + b3.reshape(1, 1, 1, -1)
    return jax.nn.relu(out + x)


# ------------------------------ Params ---------------------------------------


def make_params(key, inplanes, planes, eps=1e-5):
    ks = jax.random.split(key, 15)

    def fold_bn(kg, kb, km, kv, c):
        gamma = 1.0 + 0.1 * jax.random.normal(kg, (c,), jnp.float32)
        beta = 0.1 * jax.random.normal(kb, (c,), jnp.float32)
        mean = 0.1 * jax.random.normal(km, (c,), jnp.float32)
        var = jnp.abs(jax.random.normal(kv, (c,), jnp.float32)) + 0.5
        scale = gamma / jnp.sqrt(var + eps)
        bias = beta - mean * scale
        return scale, bias

    w1 = 0.1 * jax.random.normal(ks[0], (inplanes, planes), jnp.float32)
    w2 = 0.1 * jax.random.normal(ks[1], (3, 3, planes, planes), jnp.float32)
    w3 = 0.1 * jax.random.normal(ks[2], (planes, planes * 4), jnp.float32)
    s1, b1 = fold_bn(ks[3], ks[4], ks[5], ks[6], planes)
    s2, b2 = fold_bn(ks[7], ks[8], ks[9], ks[10], planes)
    s3, b3 = fold_bn(ks[11], ks[12], ks[13], ks[14], planes * 4)
    return dict(w1=w1, w2=w2, w3=w3, s1=s1, b1=b1, s2=s2, b2=b2, s3=s3, b3=b3)


# -------------------------------- Main ----------------------------------------


if __name__ == "__main__":
    key = jax.random.PRNGKey(0)
    kx, kp = jax.random.split(key)

    # Small but lane-aligned shapes: inplanes = planes*4 = 128 so the residual /
    # output channels fill a full 128-lane vreg; row tile 8 -> grid (2, 2),
    # exercising both the clamped/zeroed and the real halo-row paths.
    N, planes, H, W = 2, 32, 16, 16
    inplanes = planes * 4
    x = jax.random.normal(kx, (N, H, W, inplanes), jnp.float32)   # NHWC input
    params = make_params(kp, inplanes, planes)

    fwd = jax.jit(lambda xx, pp: bottleneck_forward(xx, pp, row_tile=8))
    out = jax.block_until_ready(fwd(x, params))

    ref = jax.block_until_ready(reference_forward(x, params))
    np.testing.assert_allclose(np.asarray(out), np.asarray(ref),
                               rtol=1e-2, atol=1e-2)
    assert out.shape == (N, H, W, inplanes)
    print("KERNEL_OK")
</pallas_src>

<mosaic_0001>
module attributes {stable_mosaic.version = 11 : i64} {
  func.func @_bottleneck_kernel(%arg0: i32, %arg1: i32, %arg2: memref<2x16x16x128xf32, #tpu.memory_space<any>>, %arg3: memref<1x8x16x128xf32, #tpu.memory_space<vmem>>, %arg4: memref<128x32xbf16, #tpu.memory_space<vmem>>, %arg5: memref<288x32xbf16, #tpu.memory_space<vmem>>, %arg6: memref<32x128xbf16, #tpu.memory_space<vmem>>, %arg7: memref<1x32xf32, #tpu.memory_space<vmem>>, %arg8: memref<1x32xf32, #tpu.memory_space<vmem>>, %arg9: memref<1x128xf32, #tpu.memory_space<vmem>>, %arg10: memref<1x8x16x128xf32, #tpu.memory_space<vmem>>, %arg11: memref<2x16x128xf32, #tpu.memory_space<vmem>>, %arg12: memref<2x!tpu.dma_semaphore, #tpu.memory_space<semaphore_mem>>) attributes {dimension_semantics = [#tpu.dimension_semantics<parallel>, #tpu.dimension_semantics<parallel>], iteration_bounds = array<i64: 2, 2>, scalar_prefetch = 0 : i64, scratch_operands = 2 : i64, tpu.core_type = #tpu.core_type<tc>, window_params = [{}, {transform_indices = @transform_1, window_bounds = array<i64: 1, 8, 16, 128>}, {pipeline_mode = #tpu.pipeline_mode<synchronous>, transform_indices = @transform_2, window_bounds = array<i64: 128, 32>}, {pipeline_mode = #tpu.pipeline_mode<synchronous>, transform_indices = @transform_3, window_bounds = array<i64: 288, 32>}, {pipeline_mode = #tpu.pipeline_mode<synchronous>, transform_indices = @transform_4, window_bounds = array<i64: 32, 128>}, {pipeline_mode = #tpu.pipeline_mode<synchronous>, transform_indices = @transform_5, window_bounds = array<i64: 1, 32>}, {pipeline_mode = #tpu.pipeline_mode<synchronous>, transform_indices = @transform_6, window_bounds = array<i64: 1, 32>}, {pipeline_mode = #tpu.pipeline_mode<synchronous>, transform_indices = @transform_7, window_bounds = array<i64: 1, 128>}, {transform_indices = @transform_8, window_bounds = array<i64: 1, 8, 16, 128>}]} {
    %c8_i32 = arith.constant 8 : i32
    %0 = arith.muli %arg1, %c8_i32 : i32
    %c1_i32 = arith.constant 1 : i32
    %1 = arith.subi %0, %c1_i32 : i32
    %c0_i32 = arith.constant 0 : i32
    %2 = arith.maxsi %1, %c0_i32 : i32
    %c8_i32_0 = arith.constant 8 : i32
    %3 = arith.addi %0, %c8_i32_0 : i32
    %c15_i32 = arith.constant 15 : i32
    %4 = arith.minsi %3, %c15_i32 : i32
    %c0_i32_1 = arith.constant 0 : i32
    %c0_i32_2 = arith.constant 0 : i32
    %c0_i32_3 = arith.constant 0 : i32
    %5 = tpu.memref_slice %arg2[%arg0, %2, %c0_i32_2, %c0_i32_3] : memref<2x16x16x128xf32, #tpu.memory_space<any>> -> memref<1x1x16x128xf32, #tpu.memory_space<any>>
    %6 = tpu.memref_squeeze %5 : memref<1x1x16x128xf32, #tpu.memory_space<any>> -> memref<1x16x128xf32, #tpu.memory_space<any>>
    %c0_i32_4 = arith.constant 0 : i32
    %c0_i32_5 = arith.constant 0 : i32
    %c0_i32_6 = arith.constant 0 : i32
    %7 = tpu.memref_slice %arg11[%c0_i32_4, %c0_i32_5, %c0_i32_6] : memref<2x16x128xf32, #tpu.memory_space<vmem>> -> memref<1x16x128xf32, #tpu.memory_space<vmem>>
    %8 = tpu.memref_slice %arg12[%c0_i32_1] : memref<2x!tpu.dma_semaphore, #tpu.memory_space<semaphore_mem>> -> memref<1x!tpu.dma_semaphore, #tpu.memory_space<semaphore_mem>>
    %9 = tpu.memref_squeeze %8 : memref<1x!tpu.dma_semaphore, #tpu.memory_space<semaphore_mem>> -> memref<!tpu.dma_semaphore, #tpu.memory_space<semaphore_mem>>
    tpu.enqueue_dma source(%6 : memref<1x16x128xf32, #tpu.memory_space<any>>) target(%7 : memref<1x16x128xf32, #tpu.memory_space<vmem>>) target_semaphore(%9 : memref<!tpu.dma_semaphore, #tpu.memory_space<semaphore_mem>>)
    %c1_i32_7 = arith.constant 1 : i32
    %c0_i32_8 = arith.constant 0 : i32
    %c0_i32_9 = arith.constant 0 : i32
    %10 = tpu.memref_slice %arg2[%arg0, %4, %c0_i32_8, %c0_i32_9] : memref<2x16x16x128xf32, #tpu.memory_space<any>> -> memref<1x1x16x128xf32, #tpu.memory_space<any>>
    %11 = tpu.memref_squeeze %10 : memref<1x1x16x128xf32, #tpu.memory_space<any>> -> memref<1x16x128xf32, #tpu.memory_space<any>>
    %c1_i32_10 = arith.constant 1 : i32
    %c0_i32_11 = arith.constant 0 : i32
    %c0_i32_12 = arith.constant 0 : i32
    %12 = tpu.memref_slice %arg11[%c1_i32_10, %c0_i32_11, %c0_i32_12] : memref<2x16x128xf32, #tpu.memory_space<vmem>> -> memref<1x16x128xf32, #tpu.memory_space<vmem>>
    %13 = tpu.memref_slice %arg12[%c1_i32_7] : memref<2x!tpu.dma_semaphore, #tpu.memory_space<semaphore_mem>> -> memref<1x!tpu.dma_semaphore, #tpu.memory_space<semaphore_mem>>
    %14 = tpu.memref_squeeze %13 : memref<1x!tpu.dma_semaphore, #tpu.memory_space<semaphore_mem>> -> memref<!tpu.dma_semaphore, #tpu.memory_space<semaphore_mem>>
    tpu.enqueue_dma source(%11 : memref<1x16x128xf32, #tpu.memory_space<any>>) target(%12 : memref<1x16x128xf32, #tpu.memory_space<vmem>>) target_semaphore(%14 : memref<!tpu.dma_semaphore, #tpu.memory_space<semaphore_mem>>)
    %c0 = arith.constant 0 : index
    %c0_13 = arith.constant 0 : index
    %c0_14 = arith.constant 0 : index
    %c0_15 = arith.constant 0 : index
    %15 = vector.load %arg3[%c0, %c0_13, %c0_14, %c0_15] : memref<1x8x16x128xf32, #tpu.memory_space<vmem>>, vector<1x8x16x128xf32>
    %16 = vector.shape_cast %15 : vector<1x8x16x128xf32> to vector<128x128xf32>
    %17 = arith.truncf %16 : vector<128x128xf32> to vector<128x128xbf16>
    %c0_16 = arith.constant 0 : index
    %c0_17 = arith.constant 0 : index
    %18 = vector.load %arg4[%c0_16, %c0_17] : memref<128x32xbf16, #tpu.memory_space<vmem>>, vector<128x32xbf16>
    %cst = arith.constant dense<0.000000e+00> : vector<128x32xf32>
    %19 = tpu.matmul %17, %18, %cst {dimension_numbers = #tpu.dot_dimension_numbers<[1], [0], [0], [1], [0, 0, 1, 1], [], []>} : vector<128x128xbf16>, vector<128x32xbf16>, vector<128x32xf32> -> vector<128x32xf32>
    %c0_18 = arith.constant 0 : index
    %c0_19 = arith.constant 0 : index
    %20 = vector.load %arg7[%c0_18, %c0_19] : memref<1x32xf32, #tpu.memory_space<vmem>>, vector<1x32xf32>
    %21 = vector.broadcast %20 : vector<1x32xf32> to vector<128x32xf32>
    %22 = arith.addf %19, %21 : vector<128x32xf32>
    %cst_20 = arith.constant 0.000000e+00 : f32
    %23 = vector.broadcast %cst_20 : f32 to vector<128x32xf32>
    %24 = arith.maximumf %22, %23 : vector<128x32xf32>
    %c0_i32_21 = arith.constant 0 : i32
    %c0_i32_22 = arith.constant 0 : i32
    %c0_i32_23 = arith.constant 0 : i32
    %25 = tpu.memref_slice %arg2[%arg0, %2, %c0_i32_22, %c0_i32_23] : memref<2x16x16x128xf32, #tpu.memory_space<any>> -> memref<1x1x16x128xf32, #tpu.memory_space<any>>
    %26 = tpu.memref_squeeze %25 : memref<1x1x16x128xf32, #tpu.memory_space<any>> -> memref<1x16x128xf32, #tpu.memory_space<any>>
    %c0_i32_24 = arith.constant 0 : i32
    %c0_i32_25 = arith.constant 0 : i32
    %c0_i32_26 = arith.constant 0 : i32
    %27 = tpu.memref_slice %arg11[%c0_i32_24, %c0_i32_25, %c0_i32_26] : memref<2x16x128xf32, #tpu.memory_space<vmem>> -> memref<1x16x128xf32, #tpu.memory_space<vmem>>
    %28 = tpu.memref_slice %arg12[%c0_i32_21] : memref<2x!tpu.dma_semaphore, #tpu.memory_space<semaphore_mem>> -> memref<1x!tpu.dma_semaphore, #tpu.memory_space<semaphore_mem>>
    %29 = tpu.memref_squeeze %28 : memref<1x!tpu.dma_semaphore, #tpu.memory_space<semaphore_mem>> -> memref<!tpu.dma_semaphore, #tpu.memory_space<semaphore_mem>>
    tpu.wait_dma2 semaphore(%29 : memref<!tpu.dma_semaphore, #tpu.memory_space<semaphore_mem>>) src(%26 : memref<1x16x128xf32, #tpu.memory_space<any>>) dst(%27 : memref<1x16x128xf32, #tpu.memory_space<vmem>>)
    %c1_i32_27 = arith.constant 1 : i32
    %c0_i32_28 = arith.constant 0 : i32
    %c0_i32_29 = arith.constant 0 : i32
    %30 = tpu.memref_slice %arg2[%arg0, %4, %c0_i32_28, %c0_i32_29] : memref<2x16x16x128xf32, #tpu.memory_space<any>> -> memref<1x1x16x128xf32, #tpu.memory_space<any>>
    %31 = tpu.memref_squeeze %30 : memref<1x1x16x128xf32, #tpu.memory_space<any>> -> memref<1x16x128xf32, #tpu.memory_space<any>>
    %c1_i32_30 = arith.constant 1 : i32
    %c0_i32_31 = arith.constant 0 : i32
    %c0_i32_32 = arith.constant 0 : i32
    %32 = tpu.memref_slice %arg11[%c1_i32_30, %c0_i32_31, %c0_i32_32] : memref<2x16x128xf32, #tpu.memory_space<vmem>> -> memref<1x16x128xf32, #tpu.memory_space<vmem>>
    %33 = tpu.memref_slice %arg12[%c1_i32_27] : memref<2x!tpu.dma_semaphore, #tpu.memory_space<semaphore_mem>> -> memref<1x!tpu.dma_semaphore, #tpu.memory_space<semaphore_mem>>
    %34 = tpu.memref_squeeze %33 : memref<1x!tpu.dma_semaphore, #tpu.memory_space<semaphore_mem>> -> memref<!tpu.dma_semaphore, #tpu.memory_space<semaphore_mem>>
    tpu.wait_dma2 semaphore(%34 : memref<!tpu.dma_semaphore, #tpu.memory_space<semaphore_mem>>) src(%31 : memref<1x16x128xf32, #tpu.memory_space<any>>) dst(%32 : memref<1x16x128xf32, #tpu.memory_space<vmem>>)
    %c0_33 = arith.constant 0 : index
    %c0_34 = arith.constant 0 : index
    %c0_35 = arith.constant 0 : index
    %35 = vector.load %arg11[%c0_33, %c0_34, %c0_35] : memref<2x16x128xf32, #tpu.memory_space<vmem>>, vector<2x16x128xf32>
    %36 = vector.shape_cast %35 : vector<2x16x128xf32> to vector<32x128xf32>
    %37 = arith.truncf %36 : vector<32x128xf32> to vector<32x128xbf16>
    %c0_36 = arith.constant 0 : index
    %c0_37 = arith.constant 0 : index
    %38 = vector.load %arg4[%c0_36, %c0_37] : memref<128x32xbf16, #tpu.memory_space<vmem>>, vector<128x32xbf16>
    %cst_38 = arith.constant dense<0.000000e+00> : vector<32x32xf32>
    %39 = tpu.matmul %37, %38, %cst_38 {dimension_numbers = #tpu.dot_dimension_numbers<[1], [0], [0], [1], [0, 0, 1, 1], [], []>} : vector<32x128xbf16>, vector<128x32xbf16>, vector<32x32xf32> -> vector<32x32xf32>
    %c0_39 = arith.constant 0 : index
    %c0_40 = arith.constant 0 : index
    %40 = vector.load %arg7[%c0_39, %c0_40] : memref<1x32xf32, #tpu.memory_space<vmem>>, vector<1x32xf32>
    %41 = vector.broadcast %40 : vector<1x32xf32> to vector<32x32xf32>
    %42 = arith.addf %39, %41 : vector<32x32xf32>
    %cst_41 = arith.constant 0.000000e+00 : f32
    %43 = vector.broadcast %cst_41 : f32 to vector<32x32xf32>
    %44 = arith.maximumf %42, %43 : vector<32x32xf32>
    %c0_i32_42 = arith.constant 0 : i32
    %45 = arith.cmpi sgt, %arg1, %c0_i32_42 : i32
    %46 = arith.extui %45 : i1 to i32
    %47 = arith.sitofp %46 : i32 to f32
    %c1_i32_43 = arith.constant 1 : i32
    %48 = arith.cmpi slt, %arg1, %c1_i32_43 : i32
    %49 = arith.extui %48 : i1 to i32
    %50 = arith.sitofp %49 : i32 to f32
    %51 = vector.extract_strided_slice %44 {offsets = [0, 0], sizes = [16, 32], strides = [1, 1]} : vector<32x32xf32> to vector<16x32xf32>
    %52 = vector.broadcast %47 : f32 to vector<16x32xf32>
    %53 = arith.mulf %51, %52 : vector<16x32xf32>
    %54 = vector.extract_strided_slice %44 {offsets = [16, 0], sizes = [16, 32], strides = [1, 1]} : vector<32x32xf32> to vector<16x32xf32>
    %55 = vector.broadcast %50 : f32 to vector<16x32xf32>
    %56 = arith.mulf %54, %55 : vector<16x32xf32>
    %57 = tpu.concatenate %53, %24, %56 in 0 : vector<16x32xf32>, vector<128x32xf32>, vector<16x32xf32> -> vector<160x32xf32>
    %58 = tpu.iota {dimensions = array<i32: 0>} : vector<160x1xi32>
    %c16_i32 = arith.constant 16 : i32
    %c0_i32_44 = arith.constant 0 : i32
    %59 = arith.cmpi eq, %c16_i32, %c0_i32_44 : i32
    %c1_i32_45 = arith.constant 1 : i32
    %60 = arith.select %59, %c1_i32_45, %c16_i32 : i32
    %61 = vector.broadcast %60 : i32 to vector<160x1xi32>
    %62 = arith.remsi %58, %61 : vector<160x1xi32>
    %c0_i32_46 = arith.constant 0 : i32
    %63 = vector.broadcast %c0_i32_46 : i32 to vector<160x1xi32>
    %64 = arith.cmpi ne, %62, %63 : vector<160x1xi32>
    %c0_i32_47 = arith.constant 0 : i32
    %65 = vector.broadcast %c0_i32_47 : i32 to vector<160x1xi32>
    %66 = arith.cmpi slt, %62, %65 : vector<160x1xi32>
    %c0_i32_48 = arith.constant 0 : i32
    %67 = arith.cmpi slt, %60, %c0_i32_48 : i32
    %68 = vector.broadcast %67 : i1 to vector<160x1xi1>
    %69 = vector.broadcast %68 : vector<160x1xi1> to vector<160x1xi1>
    %70 = arith.xori %66, %69 : vector<160x1xi1>
    %71 = arith.andi %70, %64 : vector<160x1xi1>
    %72 = vector.broadcast %60 : i32 to vector<160x1xi32>
    %73 = arith.addi %62, %72 : vector<160x1xi32>
    %74 = arith.select %71, %73, %62 : vector<160x1xi1>, vector<160x1xi32>
    %c0_i32_49 = arith.constant 0 : i32
    %75 = vector.broadcast %c0_i32_49 : i32 to vector<160x1xi32>
    %76 = arith.cmpi ne, %74, %75 : vector<160x1xi32>
    %c1_i32_50 = arith.constant 1 : i32
    %77 = tpu.dynamic_rotate %57 by %c1_i32_50 dim 0 : vector<160x32xf32>, i32 -> vector<160x32xf32>
    %cst_51 = arith.constant 0.000000e+00 : f32
    %78 = vector.shape_cast %76 : vector<160x1xi1> to vector<160x1xi1>
    %79 = vector.broadcast %78 : vector<160x1xi1> to vector<160x32xi1>
    %80 = vector.broadcast %cst_51 : f32 to vector<160x32xf32>
    %81 = arith.select %79, %77, %80 : vector<160x32xi1>, vector<160x32xf32>
    %c15_i32_52 = arith.constant 15 : i32
    %82 = vector.broadcast %c15_i32_52 : i32 to vector<160x1xi32>
    %83 = arith.cmpi ne, %74, %82 : vector<160x1xi32>
    %c159_i32 = arith.constant 159 : i32
    %84 = tpu.dynamic_rotate %57 by %c159_i32 dim 0 : vector<160x32xf32>, i32 -> vector<160x32xf32>
    %cst_53 = arith.constant 0.000000e+00 : f32
    %85 = vector.shape_cast %83 : vector<160x1xi1> to vector<160x1xi1>
    %86 = vector.broadcast %85 : vector<160x1xi1> to vector<160x32xi1>
    %87 = vector.broadcast %cst_53 : f32 to vector<160x32xf32>
    %88 = arith.select %86, %84, %87 : vector<160x32xi1>, vector<160x32xf32>
    %89 = vector.extract_strided_slice %81 {offsets = [0, 0], sizes = [128, 32], strides = [1, 1]} : vector<160x32xf32> to vector<128x32xf32>
    %90 = vector.extract_strided_slice %57 {offsets = [0, 0], sizes = [128, 32], strides = [1, 1]} : vector<160x32xf32> to vector<128x32xf32>
    %91 = vector.extract_strided_slice %88 {offsets = [0, 0], sizes = [128, 32], strides = [1, 1]} : vector<160x32xf32> to vector<128x32xf32>
    %92 = vector.extract_strided_slice %81 {offsets = [16, 0], sizes = [128, 32], strides = [1, 1]} : vector<160x32xf32> to vector<128x32xf32>
    %93 = vector.extract_strided_slice %57 {offsets = [16, 0], sizes = [128, 32], strides = [1, 1]} : vector<160x32xf32> to vector<128x32xf32>
    %94 = vector.extract_strided_slice %88 {offsets = [16, 0], sizes = [128, 32], strides = [1, 1]} : vector<160x32xf32> to vector<128x32xf32>
    %95 = vector.extract_strided_slice %81 {offsets = [32, 0], sizes = [128, 32], strides = [1, 1]} : vector<160x32xf32> to vector<128x32xf32>
    %96 = vector.extract_strided_slice %57 {offsets = [32, 0], sizes = [128, 32], strides = [1, 1]} : vector<160x32xf32> to vector<128x32xf32>
    %97 = vector.extract_strided_slice %88 {offsets = [32, 0], sizes = [128, 32], strides = [1, 1]} : vector<160x32xf32> to vector<128x32xf32>
    %98 = tpu.concatenate %89, %90, %91, %92, %93, %94, %95, %96, %97 in 1 : vector<128x32xf32>, vector<128x32xf32>, vector<128x32xf32>, vector<128x32xf32>, vector<128x32xf32>, vector<128x32xf32>, vector<128x32xf32>, vector<128x32xf32>, vector<128x32xf32> -> vector<128x288xf32>
    %99 = arith.truncf %98 : vector<128x288xf32> to vector<128x288xbf16>
    %c0_54 = arith.constant 0 : index
    %c0_55 = arith.constant 0 : index
    %100 = vector.load %arg5[%c0_54, %c0_55] : memref<288x32xbf16, #tpu.memory_space<vmem>>, vector<288x32xbf16>
    %cst_56 = arith.constant dense<0.000000e+00> : vector<128x32xf32>
    %101 = tpu.matmul %99, %100, %cst_56 {dimension_numbers = #tpu.dot_dimension_numbers<[1], [0], [0], [1], [0, 0, 1, 1], [], []>} : vector<128x288xbf16>, vector<288x32xbf16>, vector<128x32xf32> -> vector<128x32xf32>
    %c0_57 = arith.constant 0 : index
    %c0_58 = arith.constant 0 : index
    %102 = vector.load %arg8[%c0_57, %c0_58] : memref<1x32xf32, #tpu.memory_space<vmem>>, vector<1x32xf32>
    %103 = vector.broadcast %102 : vector<1x32xf32> to vector<128x32xf32>
    %104 = arith.addf %101, %103 : vector<128x32xf32>
    %cst_59 = arith.constant 0.000000e+00 : f32
    %105 = vector.broadcast %cst_59 : f32 to vector<128x32xf32>
    %106 = arith.maximumf %104, %105 : vector<128x32xf32>
    %107 = arith.truncf %106 : vector<128x32xf32> to vector<128x32xbf16>
    %c0_60 = arith.constant 0 : index
    %c0_61 = arith.constant 0 : index
    %108 = vector.load %arg6[%c0_60, %c0_61] : memref<32x128xbf16, #tpu.memory_space<vmem>>, vector<32x128xbf16>
    %cst_62 = arith.constant dense<0.000000e+00> : vector<128x128xf32>
    %109 = tpu.matmul %107, %108, %cst_62 {dimension_numbers = #tpu.dot_dimension_numbers<[1], [0], [0], [1], [0, 0, 1, 1], [], []>} : vector<128x32xbf16>, vector<32x128xbf16>, vector<128x128xf32> -> vector<128x128xf32>
    %c0_63 = arith.constant 0 : index
    %c0_64 = arith.constant 0 : index
    %110 = vector.load %arg9[%c0_63, %c0_64] : memref<1x128xf32, #tpu.memory_space<vmem>>, vector<1x128xf32>
    %111 = vector.broadcast %110 : vector<1x128xf32> to vector<128x128xf32>
    %112 = arith.addf %109, %111 : vector<128x128xf32>
    %113 = arith.addf %112, %16 : vector<128x128xf32>
    %cst_65 = arith.constant 0.000000e+00 : f32
    %114 = vector.broadcast %cst_65 : f32 to vector<128x128xf32>
    %115 = arith.maximumf %113, %114 : vector<128x128xf32>
    %116 = vector.shape_cast %115 : vector<128x128xf32> to vector<1x8x16x128xf32>
    %c0_66 = arith.constant 0 : index
    %c0_67 = arith.constant 0 : index
    %c0_68 = arith.constant 0 : index
    %c0_69 = arith.constant 0 : index
    %117 = vector.load %arg10[%c0_66, %c0_67, %c0_68, %c0_69] : memref<1x8x16x128xf32, #tpu.memory_space<vmem>>, vector<1x8x16x128xf32>
    tpu.vector_store %arg10[%c0_66, %c0_67, %c0_68, %c0_69], %116 {strides = array<i32>} : memref<1x8x16x128xf32, #tpu.memory_space<vmem>>, vector<1x8x16x128xf32>,
    return
  }
  func.func @transform_1(%arg0: i32, %arg1: i32) -> (i32, i32, i32, i32) {
    %c0_i32 = arith.constant 0 : i32
    %c0_i32_0 = arith.constant 0 : i32
    %c0_i32_1 = arith.constant 0 : i32
    return %arg0, %arg1, %c0_i32, %c0_i32_0 : i32, i32, i32, i32
  }
  func.func @transform_2(%arg0: i32, %arg1: i32) -> (i32, i32) {
    %c0_i32 = arith.constant 0 : i32
    %c0_i32_0 = arith.constant 0 : i32
    %c0_i32_1 = arith.constant 0 : i32
    return %c0_i32, %c0_i32_0 : i32, i32
  }
  func.func @transform_3(%arg0: i32, %arg1: i32) -> (i32, i32) {
    %c0_i32 = arith.constant 0 : i32
    %c0_i32_0 = arith.constant 0 : i32
    %c0_i32_1 = arith.constant 0 : i32
    return %c0_i32, %c0_i32_0 : i32, i32
  }
  func.func @transform_4(%arg0: i32, %arg1: i32) -> (i32, i32) {
    %c0_i32 = arith.constant 0 : i32
    %c0_i32_0 = arith.constant 0 : i32
    %c0_i32_1 = arith.constant 0 : i32
    return %c0_i32, %c0_i32_0 : i32, i32
  }
  func.func @transform_5(%arg0: i32, %arg1: i32) -> (i32, i32) {
    %c0_i32 = arith.constant 0 : i32
    %c0_i32_0 = arith.constant 0 : i32
    %c0_i32_1 = arith.constant 0 : i32
    return %c0_i32, %c0_i32_0 : i32, i32
  }
  func.func @transform_6(%arg0: i32, %arg1: i32) -> (i32, i32) {
    %c0_i32 = arith.constant 0 : i32
    %c0_i32_0 = arith.constant 0 : i32
    %c0_i32_1 = arith.constant 0 : i32
    return %c0_i32, %c0_i32_0 : i32, i32
  }
  func.func @transform_7(%arg0: i32, %arg1: i32) -> (i32, i32) {
    %c0_i32 = arith.constant 0 : i32
    %c0_i32_0 = arith.constant 0 : i32
    %c0_i32_1 = arith.constant 0 : i32
    return %c0_i32, %c0_i32_0 : i32, i32
  }
  func.func @transform_8(%arg0: i32, %arg1: i32) -> (i32, i32, i32, i32) {
    %c0_i32 = arith.constant 0 : i32
    %c0_i32_0 = arith.constant 0 : i32
    %c0_i32_1 = arith.constant 0 : i32
    return %arg0, %arg1, %c0_i32, %c0_i32_0 : i32, i32, i32, i32
  }
}

</mosaic_0001>

<bundles_post_ra>
// kernel: _lambda_.1
= control target key start
LH: loop header
LB: loop body
LE: loop exit
PB: predicated region body
PF: predicated region fallthrough
CT: control target
= control target key end

     0   :  { %13 = vsyncpa [#allocation5], 0  ;;  %s4356_s0 = inlined_call_operand.vmem [shape: f32[2,16,16,128], index: 0, kind: input, shape index: {}, may-alias: {0,1}]   ;;  %s4357_s1 = inlined_call_operand.vmem [shape: f32[2,16,16,128], index: 1, kind: input, shape index: {}, may-alias: {0,1}]   ;;  %s4358_s2 = inlined_call_operand.vmem [shape: bf16[128,32], index: 2, kind: input, shape index: {}]   ;;  %s4359_s3 = inlined_call_operand.vmem [shape: bf16[288,32], index: 3, kind: input, shape index: {}]   ;;  %s4360_s4 = inlined_call_operand.vmem [shape: bf16[32,128], index: 4, kind: input, shape index: {}]   ;;  %s4361_s5 = inlined_call_operand.vmem [shape: f32[1,32], index: 5, kind: input, shape index: {}]   ;;  %s4362_s6 = inlined_call_operand.vmem [shape: f32[1,32], index: 6, kind: input, shape index: {}]   ;;  %s4363_s7 = inlined_call_operand.vmem [shape: f32[1,128], index: 7, kind: input, shape index: {}]   ;;  %s4364_s8 = inlined_call_operand.hbm [shape: f32[2,16,16,128], index: 8, kind: output, shape index: {}]  }
   0x1   :  { %15 = vsyncpa [#allocation5 + $0x1], 0  ;;  %s3253_s27 = smov 0   ;;  %s3255_s28 = smov 0  }
   0x2   :  { %s3257_s29 = smov 0   ;;  %s3259_s30 = smov 0  }
   0x3   :  { %s3261_s9 = smov 0   ;;  %s3263_s10 = smov 0  }
   0x4   :  { %s3265_s11 = smov 0   ;;  %s3267_s12 = smov 0  }
   0x5 LB: > { %4398 = sst [smem:[#allocation11_spill]] %s3172_s27  ;;  %s2467_s13 = sadd.s32 4294967295, %s3200_s12   ;;  %s3200_s12 = sphi %s3267_s12, %s21_s12   ;;  %s3196_s11 = sphi %s3265_s11, %s4495_s11   ;;  %s3192_s10 = sphi %s3263_s10, %s4494_s10   ;;  %s3188_s9 = sphi %s3261_s9, %s4493_s9   ;;  %s3184_s30 = sphi %s3259_s30, %s4492_s30   ;;  %s3180_s29 = sphi %s3257_s29, %s4498_s29   ;;  %s3176_s28 = sphi %s3255_s28, %s4497_s28   ;;  %s3172_s27 = sphi %s3253_s27, %s4496_s27  }
   0x6   : > { %4399 = sst [smem:[#allocation12_spill]] %s3180_s29  ;;  %s2468_s14 = sadd.s32 4294967294, %s3200_s12  }
   0x7   : > { %4400 = sst [smem:[#allocation13_spill]] %s3192_s10  ;;  %s30_s15 = sadd.s32 1, %s3192_s10 }
   0x8   : > { %4401 = sst [smem:[#allocation14_spill]] %s3196_s11  ;;  %p31_p0 = scmp.ge.s32.totalorder %s30_s15, 2 }
   0x9   : > { %4402 = sst [smem:[#allocation15_spill]] %s3200_s12  ;;  %s33_s16 = sadd.s32 1, %s3196_s11 }
   0xa   : > { %p206_p1 = scmp.ne.s32.totalorder %s3180_s29, %s3176_s28  ;;  %p207_p2 = scmp.eq.s32.totalorder %s2467_s13, 3 }
   0xb   : > { %s4500_s15 = smov (%p31_p0, %s30_s15), 0  ;;  %s4502_s16 = smov (!%p31_p0, %s33_s16), %s3196_s11 }
   0xc   : > { %4403 = sst [smem:[#allocation16_spill]] %s4500_s15  ;;  %s192_s17 = ssub.s32 %s3192_s10, %s4500_s15 }
   0xd   : > { %p3304_p3 = por %p207_p2, %p206_p1  ;;  %p35_p4 = scmp.ge.s32.totalorder %s4502_s16, 2 }
   0xe   : > { %p212_p5 = scmp.ne.s32.totalorder %s3176_s28, %s3172_s27  ;;  %p213_p6 = scmp.eq.s32.totalorder %s2468_s14, 3 }
   0xf   : > { %p2471_p7 = scmp.ge.s32.totalorder %s3200_s12, 1  ;;  %s4504_s16 = smov (%p35_p4, %s4502_s16), 0 }
  0x10   : > { %4405 = sst [smem:[#allocation17_spill]] %s4504_s16  ;;  %p3313_p8 = por %p213_p6, %p212_p5 }
  0x11   : > { %p263_p9 = scmp.lt.s32.totalorder %s3200_s12, 5  ;;  %s191_s20 = ssub.s32 %s3196_s11, %s4504_s16 }
  0x12   : > { %s4406_s19 = scalar_select %p3313_p8, 1, 0 }
  0x13   : > { %s196_s21 = sadd.s32 1, %s3180_s29  ;;  %s193_s22 = sor.u32 %s192_s17, %s191_s20 }
  0x14   : > { %4407 = sst [smem:[#allocation18_spill]] %s4406_s19  ;;  %p264_p10 = pnand %p2471_p7, %p263_p9 }
  0x15   : > { %p194_p11 = scmp.eq.s32.totalorder %s193_s22, 0 }
  0x16   : > { %267 = sbr.rel (%p264_p10) target bundleno = 1229 (0x4cd), region = 48 }
  0x17   : > { %s3322_s23 = scalar_select %p194_p11, %s3180_s29, %s196_s21  }
  0x19   : > { %4408 = sst [smem:[#allocation19_spill]] %s3322_s23 }
  0x1d   : > { %s4370_s24 = sand.u32 1, %s3176_s28   ;;  %s2473_s25 = sshll.u32 %s3184_s30, 3 }
  0x1e   : > { %s2472_s26 = sshll.u32 %s4370_s24, 7  ;;  %p301_p12 = scmp.lt.s32.totalorder %s3188_s9, 1 }
  0x1f   : > { %p303_p13 = scmp.lt.s32.totalorder %s2473_s25, 15  ;;  %s2478_s20 = sadd.s32 4294967295, %s2473_s25 }
  0x20   : > { %s302_s13 = scalar_select %p301_p12, %s3188_s9, 1 }
  0x21   : > { %s304_s14 = scalar_select %p303_p13, %s2473_s25, 15 }
  0x22   : > { %s2475_s17 = sshll.u32 %s302_s13, 5  ;;  %p315_p0 = scmp.gt.s32.totalorder %s2478_s20, 0 }
  0x23   : > { %s2474_s22 = sshll.u32 %s304_s14, 1  ;;  %s317_s16 = sadd.s32 8, %s2473_s25 }
  0x24   : > { %s307_s21 = sadd.s32 %s2475_s17, %s2474_s22  ;;  %p318_p1 = scmp.lt.s32.totalorder %s317_s16, 15 }
  0x25   : > { %s2476_s15 = sshll.u32 %s307_s21, 3  ;;  %s2480_s29 = sshll.u32 %s3188_s9, 8 }
  0x26   : > { %s3333_s23 = scalar_lea.vmem %s4357_s1, %s2476_s15  ;;  %s4506_s20 = smov (!%p315_p0, %s2478_s20), 0 }
  0x27   : > { %s4508_s16 = smov (!%p318_p1, %s317_s16), 15  ;;  %s2479_s24 = sshll.u32 %s4506_s20, 4 }
  0x28   : > { %s322_s19 = sadd.s32 %s2480_s29, %s2479_s24  ;;  %s3343_s25 = scalar_lea.vmem [#allocation4], %s2472_s26 }
  0x29   : > { %s323_s13 = scalar_lea.vmem %s4356_s0, %s322_s19 }
  0x2a   : > { %v3339_v0 = vld [vmem:[%s323_s13] sm:$0xff]  ;;  %v3341_v1 = vld [vmem:[%s323_s13 + $0x8] sm:$0xff] }
  0x2b   : > { %367 = vsyncadd [#allocation3], 256  ;;  %s2481_s14 = sshll.u32 %s4508_s16, 4 }
  0x2c   : > { %s369_s10 = sadd.s32 %s2481_s14, %s2480_s29 }
  0x2d   : > { %s370_s17 = scalar_lea.vmem %s4356_s0, %s369_s10 }
  0x2e   : > { %v3348_v2 = vld [vmem:[%s370_s17] sm:$0xff]  ;;  %v3350_v3 = vld [vmem:[%s370_s17 + $0x8] sm:$0xff] }
  0x2f   : > { %416 = vsyncadd [#allocation3 + $0x1], 256  ;;  %v2826_v4 = vld [vmem:[%s4358_s2] sm:$0xff]   ;;  %v2827_v5 = vld [vmem:[%s4358_s2 + $0x8] sm:$0xff]  }
  0x30   : > { %2658 = vmatprep.subr.bf16.mxu0 %v2826_v4  ;;  %v2828_v6 = vld [vmem:[%s4358_s2 + $0x10] sm:$0xff]   ;;  %v3362_v7 = vld [vmem:[%s3333_s23] sm:$0xff]  ;;  %v3365_v8 = vld [vmem:[%s3333_s23 + $0x8] sm:$0xff] }
  0x31   : > { %2659 = vmatpush3.bf16.msra.mxu0 %v2826_v4  ;;  %4409 = vst [vmem:[#allocation20_spill] sm:$0xff] %v3362_v7  ;;  %4410 = vst [vmem:[#allocation21_spill] sm:$0xff] %v3365_v8  ;;  %v2829_v9 = vld [vmem:[%s4358_s2 + $0x18] sm:$0xff]   ;;  %v433_v10 = vpack.c.bf16 %v3365_v8, %v3362_v7  ;;  %v2830_v11 = vld [vmem:[%s4358_s2 + $0x20] sm:$0xff]  }
  0x32   : > { %2660 = vmatprep.subr.bf16.mxu0 %v2827_v5  ;;  %v2831_v12 = vld [vmem:[%s4358_s2 + $0x28] sm:$0xff]   ;;  %v2832_v13 = vld [vmem:[%s4358_s2 + $0x30] sm:$0xff]   ;;  %v2833_v14 = vld [vmem:[%s4358_s2 + $0x38] sm:$0xff]  }
  0x33   : > { %2674 = vmatprep.mubr.bf16.mxu0 %v433_v10  ;;  %v3385_v15 = vld [vmem:[%s3333_s23 + $0x10] sm:$0xff]  ;;  %v3388_v16 = vld [vmem:[%s3333_s23 + $0x18] sm:$0xff]  ;;  %v3391_v17 = vld [vmem:[%s3333_s23 + $0x20] sm:$0xff] }
  0x34   : > { %4411 = vst [vmem:[#allocation22_spill] sm:$0xff] %v3385_v15  ;;  %4412 = vst [vmem:[#allocation23_spill] sm:$0xff] %v3388_v16  ;;  %v3394_v18 = vld [vmem:[%s3333_s23 + $0x28] sm:$0xff]  ;;  %v434_v19 = vpack.c.bf16 %v3388_v16, %v3385_v15  ;;  %v3401_v21 = vld [vmem:[%s3333_s23 + $0x30] sm:$0xff] }
  0x35   : > { %2661 = vmatpush3.bf16.msra.mxu0 %v2827_v5  ;;  %4413 = vst [vmem:[#allocation24_spill] sm:$0xff] %v3391_v17  ;;  %4414 = vst [vmem:[#allocation25_spill] sm:$0xff] %v3394_v18  ;;  %v435_v20 = vpack.c.bf16 %v3394_v18, %v3391_v17  ;;  %v3404_v22 = vld [vmem:[%s3333_s23 + $0x38] sm:$0xff]  ;;  %v3407_v23 = vld [vmem:[%s3333_s23 + $0x40] sm:$0xff] }
  0x36   : > { %2662 = vmatprep.subr.bf16.mxu0 %v2828_v6  ;;  %4415 = vst [vmem:[#allocation26_spill] sm:$0xff] %v3401_v21  ;;  %4416 = vst [vmem:[#allocation27_spill] sm:$0xff] %v3404_v22  ;;  %v3410_v24 = vld [vmem:[%s3333_s23 + $0x48] sm:$0xff]  ;;  %v436_v25 = vpack.c.bf16 %v3404_v22, %v3401_v21  ;;  %v3417_v27 = vld [vmem:[%s3333_s23 + $0x50] sm:$0xff] }
  0x37   : > { %4417 = vst [vmem:[#allocation28_spill] sm:$0xff] %v3407_v23  ;;  %4418 = vst [vmem:[#allocation29_spill] sm:$0xff] %v3410_v24  ;;  %v437_v26 = vpack.c.bf16 %v3410_v24, %v3407_v23  ;;  %v3420_v28 = vld [vmem:[%s3333_s23 + $0x58] sm:$0xff]  ;;  %v3423_v29 = vld [vmem:[%s3333_s23 + $0x60] sm:$0xff] }
  0x38   : > { %4419 = vst [vmem:[#allocation30_spill] sm:$0xff] %v3417_v27  ;;  %4420 = vst [vmem:[#allocation31_spill] sm:$0xff] %v3420_v28  ;;  %v3426_v30 = vld [vmem:[%s3333_s23 + $0x68] sm:$0xff]  ;;  %v438_v31 = vpack.c.bf16 %v3420_v28, %v3417_v27  ;;  %v3433_v33 = vld [vmem:[%s3333_s23 + $0x70] sm:$0xff] }
  0x39   : > { %2663 = vmatpush3.bf16.msra.mxu0 %v2828_v6  ;;  %4421 = vst [vmem:[#allocation32_spill] sm:$0xff] %v3423_v29  ;;  %4422 = vst [vmem:[#allocation33_spill] sm:$0xff] %v3426_v30  ;;  %v439_v32 = vpack.c.bf16 %v3426_v30, %v3423_v29  ;;  %v3436_v34 = vld [vmem:[%s3333_s23 + $0x78] sm:$0xff]  ;;  %v2482_v36 = vld [vmem:[%s4361_s5] ss:$0 sm:$0xff] }
  0x3a   : > { %2664 = vmatprep.subr.bf16.mxu0 %v2829_v9  ;;  %4423 = vst [vmem:[#allocation34_spill] sm:$0xff] %v3433_v33  ;;  %4424 = vst [vmem:[#allocation35_spill] sm:$0xff] %v3436_v34  ;;  %v440_v35 = vpack.c.bf16 %v3436_v34, %v3433_v33 }
  0x3d   : > { %2665 = vmatpush3.bf16.msra.mxu0 %v2829_v9 }
  0x3e   : > { %2666 = vmatprep.subr.bf16.mxu0 %v2830_v11 }
  0x41   : > { %2667 = vmatpush3.bf16.msra.mxu0 %v2830_v11 }
  0x42   : > { %2668 = vmatprep.subr.bf16.mxu0 %v2831_v12 }
  0x45   : > { %2669 = vmatpush3.bf16.msra.mxu0 %v2831_v12 }
  0x46   : > { %2670 = vmatprep.subr.bf16.mxu0 %v2832_v13 }
  0x49   : > { %2671 = vmatpush3.bf16.msra.mxu0 %v2832_v13 }
  0x4a   : > { %2672 = vmatprep.subr.bf16.mxu0 %v2833_v14 }
  0x4d   : > { %2673 = vmatpush3.bf16.msra.mxu0 %v2833_v14 }
  0x50   : > { %2675 = vmatmul.mubr.bf16.vlgmr.msra.gmra.mrb[0].mxu0 %v434_v19 }
  0x51   : > { %2678 = vmatprep.mubr.bf16.mxu0 %v435_v20 }
  0x58   : > { %2679 = vmatmul.mubr.bf16.gmra.mrb[4].mxu0 %v436_v25 }
  0x59   : > { %2682 = vmatprep.mubr.bf16.mxu0 %v437_v26 }
  0x60   : > { %2683 = vmatmul.mubr.bf16.gmra.mrb[8].mxu0 %v438_v31 }
  0x61   : > { %2686 = vmatprep.mubr.bf16.mxu0 %v439_v32 }
  0x68   : > { %2687 = vmatmul.mubr.bf16.gmra.mrb[12].mxu0 %v440_v35 }
 0x123   : > { %v2676_v37 = vpop.f32.mrb[0].mxu0 }
 0x124   : > { %v555_v38 = vadd.f32 %v2676_v37, %v2482_v36  ;;  %v546_v39 = vpop.f32.mrb[1].mxu0 }
 0x125   : > { %v547_v40 = vadd.f32 %v2482_v36, %v546_v39  ;;  %v2677_v41 = vpop.f32.mrb[2].mxu0 }
 0x126   : > { %v3443_v42 = vmax.f32 %v555_v38, 0.0  ;;  %v558_v43 = vadd.f32 %v2677_v41, %v2482_v36  ;;  %v549_v44 = vpop.f32.mrb[3].mxu0 }
 0x127   : > { %v3445_v45 = vmax.f32 %v547_v40, 0.0  ;;  %v550_v46 = vadd.f32 %v2482_v36, %v549_v44 }
 0x128   : > { %v3447_v47 = vmax.f32 %v558_v43, 0.0 }
 0x129   : > { %v3449_v48 = vmax.f32 %v550_v46, 0.0 }
 0x12b   : > { %v2680_v49 = vpop.f32.mrb[4].mxu0 }
 0x12c   : > { %v571_v50 = vadd.f32 %v2680_v49, %v2482_v36  ;;  %v562_v51 = vpop.f32.mrb[5].mxu0 }
 0x12d   : > { %v563_v52 = vadd.f32 %v2482_v36, %v562_v51  ;;  %v2681_v53 = vpop.f32.mrb[6].mxu0 }
 0x12e   : > { %v3451_v54 = vmax.f32 %v571_v50, 0.0  ;;  %v574_v55 = vadd.f32 %v2681_v53, %v2482_v36  ;;  %v565_v56 = vpop.f32.mrb[7].mxu0 }
 0x12f   : > { %v3453_v57 = vmax.f32 %v563_v52, 0.0  ;;  %v566_v58 = vadd.f32 %v2482_v36, %v565_v56 }
 0x130   : > { %v3455_v59 = vmax.f32 %v574_v55, 0.0 }
 0x131   : > { %v3457_v60 = vmax.f32 %v566_v58, 0.0 }
 0x133   : > { %v2684_v61 = vpop.f32.mrb[8].mxu0 }
 0x134   : > { %v587_v62 = vadd.f32 %v2684_v61, %v2482_v36  ;;  %v578_v63 = vpop.f32.mrb[9].mxu0 }
 0x135   : > { %v579_v4 = vadd.f32 %v2482_v36, %v578_v63  ;;  %v2685_v5 = vpop.f32.mrb[10].mxu0 }
 0x136   : > { %v3459_v6 = vmax.f32 %v587_v62, 0.0  ;;  %v590_v9 = vadd.f32 %v2685_v5, %v2482_v36  ;;  %v581_v10 = vpop.f32.mrb[11].mxu0 }
 0x137   : > { %v3461_v11 = vmax.f32 %v579_v4, 0.0  ;;  %v582_v12 = vadd.f32 %v2482_v36, %v581_v10 }
 0x138   : > { %v3463_v13 = vmax.f32 %v590_v9, 0.0 }
 0x139   : > { %v3465_v14 = vmax.f32 %v582_v12, 0.0 }
 0x13b   : > { %v2688_v19 = vpop.f32.mrb[12].mxu0 }
 0x13c   : > { %v603_v20 = vadd.f32 %v2688_v19, %v2482_v36  ;;  %v594_v25 = vpop.f32.mrb[13].mxu0 }
 0x13d   : > { %v595_v26 = vadd.f32 %v2482_v36, %v594_v25  ;;  %v2689_v31 = vpop.f32.mrb[14].mxu0 }
 0x13e   : > { %v3467_v32 = vmax.f32 %v603_v20, 0.0  ;;  %v606_v35 = vadd.f32 %v2689_v31, %v2482_v36  ;;  %v597_v37 = vpop.f32.mrb[15].mxu0 }
 0x13f   : > { %v3469_v38 = vmax.f32 %v595_v26, 0.0  ;;  %v598_v39 = vadd.f32 %v2482_v36, %v597_v37 }
 0x140   : > { %v3471_v40 = vmax.f32 %v606_v35, 0.0 }
 0x141   : > { %v3473_v41 = vmax.f32 %v598_v39, 0.0 }
 0x142   : > { %3162 = dma.done.wait [#allocation3], 256 }
 0x143   : > { %3163 = vsyncadd [#allocation3], 4294967040 }
 0x144   : > { %3164 = dma.done.wait [#allocation3 + $0x1], 256 }
 0x145   : > { %3165 = vsyncadd [#allocation3 + $0x1], 4294967040  ;;  %v635_v43 = vpack.c.bf16 %v3341_v1, %v3339_v0  ;;  %v2839_v44 = vpack.i.bf16 %v3449_v48, %v3445_v45  ;;  %v773_v46 = vlaneseq  ;;  %s3202_s23 = smov 32   ;;  %v4378_v49 = vrot.slane %v3449_v48, 7  ;;  %s3203_s19 = smov 96   ;;  %v3074_v9 = vld [vmem:[%s4358_s2] sm:$0xff]  }
 0x146   : > { %v1058_v50 = vrot.slane %v3443_v42, 7  ;;  %v3486_v51 = vpack.i.bf16 %v3447_v47, %v3443_v42  ;;  %v1059_v0 = vrot.slane %v3447_v47, 7  ;;  %v1178_v1 = vrot.slane %v3449_v48, 1  ;;  %v3075_v19 = vld [vmem:[%s4358_s2 + $0x8] sm:$0xff]   ;;  %2690 = vmatprep.subr.bf16.mxu1 %v3074_v9  ;;  %v3076_v39 = vld [vmem:[%s4358_s2 + $0x10] sm:$0xff]   ;;  %s3204_s21 = smov 64  }
 0x147   : > { %2706 = vmatprep.mubr.bf16.mxu1 %v635_v43  ;;  %2840 = vrot.lane.b32.xlu1 %v2839_v44, %s3202_s23  ;;  %v3480_v36 = vshrl.u32 %v773_v46, 7  ;;  %v1179_v55 = vrot.slane %v3443_v42, 1  ;;  %v4375_v56 = vrot.slane %v3445_v45, 1  ;;  %v1180_v58 = vrot.slane %v3447_v47, 1  ;;  %v3091_v30 = vld [vmem:[%s4359_s3 + $0x18] sm:$0xff]   ;;  %p764_p2 = scmp.lt.s32.totalorder %s3184_s30, 1 }
 0x148   : > { %2835 = vrot.lane.b32.xlu0 %v3486_v51, %s3203_s19  ;;  %v1181_v61 = vrot.slane %v3453_v57, 1  ;;  %v1060_v5 = vrot.slane %v3453_v57, 7  ;;  %2691 = vmatpush3.bf16.msra.mxu1 %v3074_v9  ;;  %v1061_v37 = vrot.slane %v3457_v60, 7  ;;  %vm1620_vm7 = vcmask 261120   ;;  %p761_p4 = scmp.gt.s32.totalorder %s3184_s30, 0  ;;  %s2547_s14 = sshll.u32 %s3184_s30, 4 }
 0x149   : > { %v778_v52 = vadd.s32 32, %v3480_v36  ;;  %vm1074_vm0 = vcmp.lt.s32.totalorder %v3480_v36, 1  ;;  %v777_v53 = vadd.s32 24, %v3480_v36  ;;  %vm1195_vm1 = vcmp.lt.s32.totalorder %v3480_v36, 7  ;;  %2692 = vmatprep.subr.bf16.mxu1 %v3075_v19  ;;  %s765_s27 = scalar_select %p764_p2, 1, 0 }
 0x14a   : > { %v1090_v63 = vsel %vm1074_vm0, %v4378_v49, %v1058_v50  ;;  %v3510_v10 = vsel %vm1074_vm0, %v1058_v50, %v1059_v0  ;;  %v779_v12 = vadd.s32 40, %v3480_v36  ;;  %v1211_v20 = vsel %vm1195_vm1, %v1178_v1, %v1179_v55  ;;  %s762_s12 = scalar_select %p761_p4, 1, 0 }
 0x14b   : > { %v826_v62 = vand.u32 15, %v778_v52  ;;  %v819_v4 = vand.u32 15, %v777_v53  ;;  %v1212_v26 = vsel %vm1195_vm1, %v4375_v56, %v1178_v1  ;;  %v780_v31 = vadd.s32 48, %v3480_v36  ;;  %s766_s24 = scvt.s32.f32 %s765_s27  ;;  %s2541_s10 = sshll.u32 %s3188_s9, 5 }
 0x14c   : > { %v833_v46 = vand.u32 15, %v779_v12  ;;  %v1209_v50 = vsel %vm1195_vm1, %v1180_v58, %v1181_v61  ;;  %v3536_v1 = vsel %vm1195_vm1, %v1179_v55, %v1180_v58  ;;  %2693 = vmatpush3.bf16.msra.mxu1 %v3075_v19  ;;  %v1088_v53 = vsel %vm1074_vm0, %v1059_v0, %v1060_v5  ;;  %v3078_v19 = vld [vmem:[%s4358_s2 + $0x20] sm:$0xff]   ;;  %s763_s29 = scvt.s32.f32 %s762_s12  ;;  %s2342_s11 = sadd.s32 %s2547_s14, %s2541_s10 }
 0x14d   : > { %vm1038_vm2 = vcmp.ne.s32.totalorder %v826_v62, 0  ;;  %vm1158_vm3 = vcmp.ne.s32.totalorder %v819_v4, 15  ;;  %v840_v52 = vand.u32 15, %v780_v31  ;;  %2694 = vmatprep.subr.bf16.mxu1 %v3076_v39  ;;  %v3077_v62 = vld [vmem:[%s4358_s2 + $0x18] sm:$0xff]   ;;  %v3548_v55 = vsel %vm1074_vm0, %v1060_v5, %v1061_v37  ;;  %s2345_s30 = sshll.u32 %s3343_s25, 4  ;;  %s2542_s9 = sshll.u32 %s2342_s11, 7  ;;  %s4292_s30 = int_to_ptr.vmem [resolvable:$true] %s2345_s30 }
 0x14e   : > { %v3518_v25 = vsel %vm1038_vm2, %v1090_v63, 0.0  ;;  %v1259_v43 = vsel %vm1158_vm3, %v1211_v20, 0.0  ;;  %vm1160_vm4 = vcmp.ne.s32.totalorder %v833_v46, 15  ;;  %v781_v0 = vadd.s32 56, %v3480_v36  ;;  %s4298_s27 = scalar_lea.hbm %s4364_s8, %s2542_s9  ;;  %s4486_s12 = sand.u32 1, %s3176_s28  }
 0x14f   : > { %v2849_v35 = vpack.i.bf16 %v3510_v10, %v3518_v25  ;;  %v2869_v44 = vpack.i.bf16 %v1259_v43, %v1212_v26  ;;  %v1261_v63 = vsel %vm1160_vm4, %v1209_v50, 0.0  ;;  %vm1040_vm5 = vcmp.ne.s32.totalorder %v840_v52, 0 }
 0x150   : > { %v2854_v58 = vpack.i.bf16 %v1261_v63, %v3536_v1  ;;  %v3552_v4 = vsel %vm1040_vm5, %v1088_v53, 0.0  ;;  %2695 = vmatpush3.bf16.msra.mxu1 %v3076_v39  ;;  %v1182_v12 = vrot.slane %v3457_v60, 1  ;;  %v1183_v5 = vrot.slane %v3451_v54, 1  ;;  %v3079_v39 = vld [vmem:[%s4358_s2 + $0x28] sm:$0xff]  }
 0x151   : > { %2850 = vrot.lane.b32.xlu1 %v2849_v35, %s3204_s21  ;;  %2845 = vrot.lane.b32.xlu0 %v2869_v44, %s3202_s23  ;;  %v3558_v9 = vpack.i.bf16 %v3548_v55, %v3552_v4  ;;  %v847_v20 = vand.u32 15, %v781_v0  ;;  %v3572_v31 = vpack.i.bf16 %v3457_v60, %v3453_v57  ;;  %v783_v46 = vadd.s32 72, %v3480_v36 }
 0x152   : > { %2696 = vmatprep.subr.bf16.mxu1 %v3077_v62  ;;  %v1207_v26 = vsel %vm1195_vm1, %v1182_v12, %v1183_v5  ;;  %v1208_v43 = vsel %vm1195_vm1, %v1181_v61, %v1182_v12  ;;  %v3082_v61 = vld [vmem:[%s4359_s3 + $0x80] sm:$0xff]   ;;  %v1184_v53 = vrot.slane %v3455_v59, 1  ;;  %v1721_v0 = vpack.c.bf16 %v1261_v63, %v3536_v1  ;;  %v3083_v12 = vld [vmem:[%s4359_s3 + $0x88] sm:$0xff]  }
 0x153   : > { %vm1162_vm6 = vcmp.ne.s32.totalorder %v847_v20, 15  ;;  %v861_v52 = vand.u32 15, %v783_v46  ;;  %v1186_v63 = vrot.slane %v3465_v14, 1  ;;  %vm1637_vm13 = vcmask 523264  }
 0x154   : > { %2697 = vmatpush3.bf16.msra.mxu1 %v3077_v62  ;;  %v1185_v62 = vrot.slane %v3461_v11, 1  ;;  %vm1654_vm14 = vcmask 785408   ;;  %v4429_v29 = vrot.slane %v3449_v48, 7  ;;  %v1064_v27 = vrot.slane %v3461_v11, 7 }
 0x155   : > { %2870 = vrot.lane.b32.xlu1 %v2869_v44, %s3204_s21  ;;  %2855 = vrot.lane.b32.xlu0 %v2854_v58, %s3202_s23  ;;  %v1263_v44 = vsel %vm1162_vm6, %v1207_v26, 0.0  ;;  %vm1164_vm8 = vcmp.ne.s32.totalorder %v861_v52, 15  ;;  %v1187_v26 = vrot.slane %v3459_v6, 1  ;;  %v1062_v52 = vrot.slane %v3451_v54, 7 }
 0x156   : > { %2698 = vmatprep.subr.bf16.mxu1 %v3078_v19  ;;  %v3587_v50 = vpack.i.bf16 %v1263_v44, %v1208_v43  ;;  %v1205_v20 = vsel %vm1195_vm1, %v1184_v53, %v1185_v62  ;;  %v4431_v22 = vrot.slane %v3471_v40, 1 }
 0x157   : > { %v1203_v46 = vsel %vm1195_vm1, %v1186_v63, %v1187_v26 }
 0x158   : > { %2699 = vmatpush3.bf16.msra.mxu1 %v3078_v19  ;;  %v785_v19 = vadd.s32 88, %v3480_v36 }
 0x159   : > { %2875 = vrot.lane.b32.xlu1 %v2849_v35, %s3203_s19  ;;  %2860 = vrot.lane.b32.xlu0 %v3558_v9, %s3204_s21  ;;  %v3080_v35 = vld [vmem:[%s4358_s2 + $0x30] sm:$0xff]  }
 0x15a   : > { %2700 = vmatprep.subr.bf16.mxu1 %v3079_v39  ;;  %v875_v1 = vand.u32 15, %v785_v19 }
 0x15c   : > { %2701 = vmatpush3.bf16.msra.mxu1 %v3079_v39  ;;  %v1724_v39 = vpack.c.bf16 %v1263_v44, %v1208_v43  ;;  %vm1166_vm9 = vcmp.ne.s32.totalorder %v875_v1, 15  ;;  %v782_v44 = vadd.s32 64, %v3480_v36 }
 0x15d   : > { %2885 = vrot.lane.b32.xlu1 %v3486_v51, %s3202_s23  ;;  %2865 = vrot.lane.b32.xlu0 %v3572_v31, %s3203_s19  ;;  %v3081_v51 = vld [vmem:[%s4358_s2 + $0x38] sm:$0xff]  }
 0x15e   : > { %2702 = vmatprep.subr.bf16.mxu1 %v3080_v35 }
 0x160   : > { %2703 = vmatpush3.bf16.msra.mxu1 %v3080_v35 }
 0x161   : > { %2895 = vrot.lane.b32.xlu1 %v2854_v58, %s3204_s21  ;;  %2880 = vrot.lane.b32.xlu0 %v3587_v50, %s3202_s23  ;;  %v636_v58 = vpack.c.bf16 %v3350_v3, %v3348_v2  ;;  %v3612_v2 = vsel %vm1195_vm1, %v1183_v5, %v1184_v53  ;;  %v3614_v3 = vsel %vm1164_vm8, %v1205_v20, 0.0  ;;  %v3626_v5 = vsel %vm1195_vm1, %v1185_v62, %v1186_v63 }
 0x162   : > { %2704 = vmatprep.subr.bf16.mxu1 %v3081_v51  ;;  %v1727_v35 = vpack.c.bf16 %v3614_v3, %v3612_v2  ;;  %v4376_v53 = vrot.slane %v3455_v59, 7  ;;  %v1086_v62 = vsel %vm1074_vm0, %v1061_v37, %v1062_v52  ;;  %v789_v20 = vadd.s32 120, %v3480_v36 }
 0x163   : > { %v1188_v63 = vrot.slane %v3463_v13, 1  ;;  %v1189_v37 = vrot.slane %v3469_v38, 1 }
 0x164   : > { %2705 = vmatpush3.bf16.msra.mxu1 %v3081_v51  ;;  %v3628_v51 = vsel %vm1166_vm9, %v1203_v46, 0.0  ;;  %v4377_v46 = vrot.slane %v3467_v32, 1 }
 0x165   : > { %2710 = vmatprep.subr.bf16.mxu1 %v3082_v61  ;;  %v1730_v43 = vpack.c.bf16 %v3628_v51, %v3626_v5  ;;  %2905 = vrot.lane.b32.xlu1 %v3558_v9, %s3203_s19 }
 0x167   : > { %2707 = vmatmul.mubr.bf16.vlgmr.msra.gmra.mrb[0].mxu1 %v636_v58  ;;  %v3644_v58 = vsel %vm1074_vm0, %v1062_v52, %v4376_v53 }
 0x168   : > { %2711 = vmatpush3.bf16.msra.mxu1 %v3082_v61  ;;  %2714 = vmatprep.mubr.msk.bf16.mxu1 %vm1620_vm7, %v1721_v0  ;;  %v854_v61 = vand.u32 15, %v782_v44  ;;  %4425 = vst [vmem:[#allocation36_spill] sm:$0xff] %v3644_v58  ;;  %v1201_v44 = vsel %vm1195_vm1, %v1188_v63, %v1189_v37 }
 0x169   : > { %2712 = vmatprep.subr.bf16.mxu1 %v3083_v12  ;;  %2920 = vrot.lane.b32.xlu1 %v3572_v31, %s3202_s23  ;;  %v3087_v31 = vld [vmem:[%s4359_s3 + $0x8] sm:$0xff]  }
 0x16a   : > { %vm1042_vm10 = vcmp.ne.s32.totalorder %v854_v61, 0  ;;  %v1202_v61 = vsel %vm1195_vm1, %v1187_v26, %v1188_v63 }
 0x16b   : > { %v3646_v0 = vsel %vm1042_vm10, %v1086_v62, 0.0 }
 0x16c   : > { %2713 = vmatpush3.bf16.msra.mxu1 %v3083_v12  ;;  %4426 = vst [vmem:[#allocation37_spill] sm:$0xff] %v3646_v0  ;;  %v787_v12 = vadd.s32 104, %v3480_v36  ;;  %v3651_v19 = vpack.i.bf16 %v3644_v58, %v3646_v0  ;;  %v4445_v0 = vrot.slane %v3471_v40, 7 }
 0x16e   : > { %v889_v1 = vand.u32 15, %v787_v12  ;;  %2890 = vrot.lane.b32.xlu0 %v3651_v19, %s3204_s21 }
 0x16f   : > { %2715 = vmatmul.mubr.msk.bf16.vlgmr.msra.gmra.mrb[4].mxu1 %vm1620_vm7, %v1724_v39  ;;  %v903_v39 = vand.u32 15, %v789_v20 }
 0x170   : > { %2718 = vmatprep.mubr.msk.bf16.mxu1 %vm1620_vm7, %v1727_v35  ;;  %v1190_v35 = vrot.slane %v3473_v41, 1  ;;  %vm1168_vm11 = vcmp.ne.s32.totalorder %v889_v1, 15 }
 0x171   : > { %vm1170_vm12 = vcmp.ne.s32.totalorder %v903_v39, 15  ;;  %v1269_v52 = vsel %vm1168_vm11, %v1201_v44, 0.0  ;;  %v3084_v39 = vld [vmem:[%s4359_s3 + $0x40] sm:$0xff]   ;;  %v3086_v44 = vld [vmem:[%s4359_s3 + $0x48] sm:$0xff]  }
 0x172   : > { %v1199_v62 = vsel %vm1195_vm1, %v1190_v35, %v4377_v46  ;;  %v3676_v9 = vsel %vm1195_vm1, %v1189_v37, %v1190_v35  ;;  %v1733_v12 = vpack.c.bf16 %v1269_v52, %v1202_v61  ;;  %v3688_v1 = vpack.i.bf16 %v1269_v52, %v1202_v61  ;;  %v3085_v35 = vld [vmem:[%s4359_s3] sm:$0xff]   ;;  %2574 = vmatprep.subr.bf16.mxu0 %v3084_v39 }
 0x173   : > { %v3680_v20 = vsel %vm1170_vm12, %v1199_v62, 0.0  ;;  %2575 = vmatpush3.bf16.msra.mxu0 %v3085_v35 }
 0x174   : > { %v1736_v26 = vpack.c.bf16 %v3680_v20, %v3676_v9  ;;  %2576 = vmatprep.subr.bf16.mxu0 %v3086_v44  ;;  %v3089_v44 = vld [vmem:[%s4359_s3 + $0x10] sm:$0xff]  }
 0x177   : > { %2719 = vmatmul.mubr.msk.bf16.gmra.mrb[8].mxu1 %vm1620_vm7, %v1730_v43  ;;  %v3664_v43 = vpack.i.bf16 %v3455_v59, %v3451_v54  ;;  %2577 = vmatpush3.bf16.msra.mxu0 %v3087_v31 }
 0x178   : > { %2722 = vmatprep.mubr.msk.bf16.mxu1 %vm1620_vm7, %v1733_v12 }
 0x179   : > { %2900 = vrot.lane.b32.xlu0 %v3664_v43, %s3203_s19 }
 0x17f   : > { %2723 = vmatmul.mubr.msk.bf16.gmra.mrb[12].mxu1 %vm1620_vm7, %v1736_v26  ;;  %v3088_v26 = vld [vmem:[%s4359_s3 + $0x50] sm:$0xff]  }
 0x180   : > { %2578 = vmatprep.subr.bf16.mxu0 %v3088_v26 }
 0x181   : > { %2579 = vmatpush3.bf16.msra.mxu0 %v3089_v44  ;;  %v792_v44 = vadd.s32 144, %v3480_v36 }
 0x183   : > { %v924_v24 = vand.u32 15, %v792_v44 }
 0x185   : > { %vm3792_vm4 = vcmp.ne.s32.totalorder %v924_v24, 0  ;;  %v3808_v24 = vpack.i.bf16 %v3614_v3, %v3612_v2 }
 0x1b9   : > { %v3690_v63 = vpop.permute.xlu1 %2840 }
 0x1ba   : > { %v2836_v37 = vpop.permute.xlu0 %2835 }
 0x1bb   : > { %v2838_v56 = vunpack.i.h.bf16 %v2836_v37  ;;  %v2837_v53 = vunpack.i.l.bf16 %v2836_v37 }
 0x1c3   : > { %v2851_v62 = vpop.permute.xlu1 %2850  ;;  %v2846_v12 = vpop.permute.xlu0 %2845 }
 0x1c4   : > { %v2853_v61 = vunpack.i.h.bf16 %v2851_v62  ;;  %v2852_v52 = vunpack.i.l.bf16 %v2851_v62  ;;  %v2848_v46 = vunpack.i.h.bf16 %v2846_v12  ;;  %v2847_v49 = vunpack.i.l.bf16 %v2846_v12 }
 0x1c6   : > { %v1672_v39 = vsel %vm1620_vm7, %v3449_v48, %v2848_v46  ;;  %v1671_v35 = vsel %vm1620_vm7, %v3445_v45, %v2847_v49  ;;  %v3090_v46 = vld [vmem:[%s4359_s3 + $0x58] sm:$0xff]  }
 0x1c7   : > { %v1687_v62 = vsel %vm1637_vm13, %v1671_v35, %v2852_v52  ;;  %v1688_v37 = vsel %vm1637_vm13, %v1672_v39, %v2853_v61  ;;  %2580 = vmatprep.subr.bf16.mxu0 %v3090_v46  ;;  %v3092_v61 = vld [vmem:[%s4359_s3 + $0x60] sm:$0xff]   ;;  %v3734_v26 = vpop.permute.xlu1 %2870 }
 0x1c8   : > { %v1703_v49 = vsel %vm1654_vm14, %v1687_v62, %v2837_v53  ;;  %v1704_v31 = vsel %vm1654_vm14, %v1688_v37, %v2838_v56  ;;  %2581 = vmatpush3.bf16.msra.mxu0 %v3091_v30  ;;  %v3093_v52 = vld [vmem:[%s4359_s3 + $0x20] sm:$0xff]   ;;  %v791_v56 = vadd.s32 136, %v3480_v36  ;;  %v793_v53 = vadd.s32 152, %v3480_v36 }
 0x1c9   : > { %v1720_v12 = vpack.c.bf16 %v1704_v31, %v1703_v49  ;;  %2582 = vmatprep.subr.bf16.mxu0 %v3092_v61  ;;  %v775_v30 = vadd.s32 8, %v3480_v36  ;;  %v784_v62 = vadd.s32 80, %v3480_v36  ;;  %v770_v37 = vstv %s766_s24  ;;  %s4304_s24 = scalar_lea.sflag [#allocation5], %s4486_s12 }
 0x1ca   : > { %v917_v39 = vand.u32 15, %v791_v56  ;;  %v931_v49 = vand.u32 15, %v793_v53  ;;  %v776_v31 = vadd.s32 16, %v3480_v36  ;;  %v2843_v61 = vunpack.i.h.bf16 %v3690_v63 }
 0x1cb   : > { %1950 = vmatprep.mubr.bf16.mxu0 %v1720_v12  ;;  %v2491_v12 = vld [vmem:[%s4361_s5] ss:$0 sm:$0xff]  ;;  %v767_v56 = vstv %s763_s29  ;;  %v805_v35 = vand.u32 15, %v775_v30  ;;  %v4430_v53 = vrot.slane %v3445_v45, 7  ;;  %v868_v23 = vand.u32 15, %v784_v62  ;;  %v3094_v62 = vld [vmem:[%s4359_s3 + $0x68] sm:$0xff]  }
 0x1cc   : > { %2583 = vmatpush3.bf16.msra.mxu0 %v3093_v52  ;;  %vm3747_vm15 = vcmp.ne.s32.totalorder %v917_v39, 15  ;;  %v2873_v52 = vunpack.i.h.bf16 %v3734_v26  ;;  %v3762_v39 = vpop.permute.xlu1 %2875  ;;  %vm3773_vm2 = vcmp.ne.s32.totalorder %v931_v49, 15  ;;  %v812_v30 = vand.u32 15, %v776_v31  ;;  %s3102_s29 = scalar_lea.vmem %s4292_s30, 2048 }
 0x1cd   : > { %v3757_v46 = vsel %vm1074_vm0, %v4430_v53, %v4429_v29  ;;  %v4432_v29 = vrot.slane %v3467_v32, 1  ;;  %vm3783_vm3 = vcmp.ne.s32.totalorder %v805_v35, 15  ;;  %v2878_v16 = vunpack.i.h.bf16 %v3762_v39  ;;  %2584 = vmatprep.subr.bf16.mxu0 %v3094_v62  ;;  %p3103_p5 = scmp.ne.s32.totalorder %s4292_s30, %s3102_s29 }
 0x1ce   : > { %v1624_v49 = vsel %vm1620_vm7, %v3757_v46, %v2843_v61  ;;  %vm3796_vm5 = vcmp.ne.s32.totalorder %v868_v23, 0  ;;  %v4441_v61 = vrot.slane %v3455_v59, 7  ;;  %v3097_v23 = vld [vmem:[%s4359_s3 + $0x30] sm:$0xff]   ;;  %vm3823_vm6 = vcmp.ne.s32.totalorder %v812_v30, 0 }
 0x1cf   : > { %v3771_v53 = vsel %vm1195_vm1, %v4432_v29, %v4431_v22  ;;  %v4396_v22 = vrot.slane %v3465_v14, 7  ;;  %p3104_p6 = pnand %p3103_p5, %p3304_p3 }
 0x1d1   : > { %p3105_p7 = pneg %p3104_p6 }
 0x23a   : > { %v2708_v28 = vpop.f32.mrb[0].mxu1 }
 0x23b   : > { %v751_v48 = vadd.f32 %v2708_v28, %v2491_v12  ;;  %v742_v18 = vpop.f32.mrb[1].mxu1  ;;  %v3095_v28 = vld [vmem:[%s4359_s3 + $0x28] sm:$0xff]  }
 0x23c   : > { %v743_v33 = vadd.f32 %v2491_v12, %v742_v18  ;;  %v2709_v17 = vpop.f32.mrb[2].mxu1  ;;  %2585 = vmatpush3.bf16.msra.mxu0 %v3095_v28  ;;  %v3821_v28 = vsel %vm1074_vm0, %v1064_v27, %v4396_v22  ;;  %v4444_v22 = vrot.slane %v3471_v40, 1 }
 0x23d   : > { %v759_v31 = vmax.f32 %v751_v48, 0.0  ;;  %v754_v29 = vadd.f32 %v2709_v17, %v2491_v12  ;;  %v745_v8 = vpop.f32.mrb[3].mxu1  ;;  %v1084_v17 = vsel %vm1074_vm0, %v4441_v61, %v1064_v27 }
 0x23e   : > { %v757_v18 = vmax.f32 %v743_v33, 0.0  ;;  %v746_v35 = vadd.f32 %v2491_v12, %v745_v8  ;;  %v3096_v8 = vld [vmem:[%s4359_s3 + $0x70] sm:$0xff]   ;;  %v1641_v33 = vsel %vm1637_vm13, %v1624_v49, %v2873_v52  ;;  %v3833_v52 = vsel %vm3796_vm5, %v1084_v17, 0.0 }
 0x23f   : > { %v3804_v48 = vmul.f32 %v770_v37, %v759_v31  ;;  %v760_v7 = vmax.f32 %v754_v29, 0.0  ;;  %2586 = vmatprep.subr.bf16.mxu0 %v3096_v8  ;;  %v3836_v27 = vsel %vm1654_vm14, %v1641_v33, %v2878_v16  ;;  %v3099_v16 = vld [vmem:[%s4359_s3 + $0x38] sm:$0xff]   ;;  %v2924_v15 = vpack.i.bf16 %v3821_v28, %v3833_v52 }
 0x240   : > { %v768_v12 = vmul.f32 %v767_v56, %v757_v18  ;;  %v758_v62 = vmax.f32 %v746_v35, 0.0  ;;  %2587 = vmatpush3.bf16.msra.mxu0 %v3097_v23 }
 0x241   : > { %v1072_v3 = vrot.slane %v3804_v48, 7  ;;  %v1193_v31 = vrot.slane %v3804_v48, 1  ;;  %v3829_v29 = vmul.f32 %v770_v37, %v760_v7 }
 0x242   : > { %v1054_v49 = vrot.slane %v768_v12, 7  ;;  %v1175_v18 = vrot.slane %v768_v12, 1  ;;  %v769_v35 = vmul.f32 %v767_v56, %v758_v62  ;;  %v3098_v56 = vld [vmem:[%s4359_s3 + $0x78] sm:$0xff]  }
 0x243   : > { %v1073_v30 = vrot.slane %v3829_v29, 7  ;;  %v1194_v61 = vrot.slane %v3829_v29, 1  ;;  %v1197_v7 = vsel %vm1195_vm1, %v4444_v22, %v1193_v31  ;;  %v1076_v37 = vsel %vm1074_vm0, %v4445_v0, %v1072_v3  ;;  %2588 = vmatprep.subr.bf16.mxu0 %v3098_v56 }
 0x244   : > { %v1055_v17 = vrot.slane %v769_v35, 7  ;;  %v1176_v8 = vrot.slane %v769_v35, 1  ;;  %v2909_v23 = vpack.i.bf16 %v769_v35, %v768_v12  ;;  %v3856_v33 = vsel %vm3747_vm15, %v1197_v7, 0.0  ;;  %2589 = vmatpush3.bf16.msra.mxu0 %v3099_v16 }
 0x245   : > { %v1739_v22 = vpack.c.bf16 %v3856_v33, %v3771_v53  ;;  %v1196_v62 = vsel %vm1195_vm1, %v1193_v31, %v1194_v61  ;;  %v1215_v0 = vsel %vm1195_vm1, %v1194_v61, %v1175_v18  ;;  %v3044_v58 = vpack.i.bf16 %v3856_v33, %v3771_v53 }
 0x246   : > { %2910 = vrot.lane.b32.xlu0 %v2909_v23, %s3202_s23  ;;  %v1275_v34 = vsel %vm3773_vm2, %v1215_v0, 0.0  ;;  %v4446_v12 = vrot.slane %v3445_v45, 1  ;;  %v1214_v31 = vsel %vm1195_vm1, %v1175_v18, %v1176_v8  ;;  %v4447_v7 = vrot.slane %v3445_v45, 7 }
 0x247   : > { %2726 = vmatprep.mubr.msk.bf16.mxu1 %vm1620_vm7, %v1739_v22  ;;  %v1742_v56 = vpack.c.bf16 %v1275_v34, %v1196_v62  ;;  %v1075_v0 = vsel %vm1074_vm0, %v1072_v3, %v1073_v30  ;;  %v4448_v18 = vunpack.i.l.bf16 %v3690_v63  ;;  %v1153_v16 = vsel %vm3792_vm4, %v1076_v37, 0.0 }
 0x248   : > { %v1213_v35 = vsel %vm1195_vm1, %v1176_v8, %v4446_v12  ;;  %v1092_v61 = vsel %vm1074_vm0, %v1055_v17, %v4447_v7  ;;  %v786_v8 = vadd.s32 96, %v3480_v36  ;;  %v3893_v21 = vpack.i.bf16 %v1075_v0, %v1153_v16 }
 0x249   : > { %v1257_v44 = vsel %vm3783_vm3, %v1213_v35, 0.0  ;;  %v1137_v23 = vsel %vm3823_vm6, %v1092_v61, 0.0  ;;  %2727 = vmatmul.mubr.msk.bf16.gmra.mrb[16].mxu1 %vm1620_vm7, %v1742_v56  ;;  %v3064_v2 = vpack.i.bf16 %v3829_v29, %v3804_v48  ;;  %v3899_v3 = vsel %vm1074_vm0, %v1054_v49, %v1055_v17 }
 0x24a   : > { %v2929_v12 = vpack.i.bf16 %v1257_v44, %v1214_v31  ;;  %v1623_v45 = vsel %vm1620_vm7, %v1137_v23, %v4448_v18  ;;  %v3903_v63 = vsel %vm1074_vm0, %v1073_v30, %v1054_v49  ;;  %2915 = vrot.lane.b32.xlu0 %v3808_v24, %s3202_s23  ;;  %v4449_v37 = vunpack.i.l.bf16 %v3734_v26 }
 0x24b   : > { %v4450_v62 = vunpack.i.l.bf16 %v3762_v39  ;;  %v2934_v49 = vpack.i.bf16 %v3757_v46, %v1137_v23  ;;  %v882_v30 = vand.u32 15, %v786_v8  ;;  %v1066_v34 = vrot.slane %v3459_v6, 7 }
 0x24c   : > { %2930 = vrot.lane.b32.xlu1 %v2929_v12, %s3204_s21  ;;  %v1640_v22 = vsel %vm1637_vm13, %v1623_v45, %v4449_v37  ;;  %v2944_v26 = vpack.i.bf16 %v3465_v14, %v3461_v11  ;;  %v1067_v39 = vrot.slane %v3463_v13, 7  ;;  %v4451_v31 = vrot.slane %v3465_v14, 7 }
 0x24d   : > { %v3916_v17 = vsel %vm1654_vm14, %v1640_v22, %v4450_v62  ;;  %vm1046_vm1 = vcmp.ne.s32.totalorder %v882_v30, 0  ;;  %v2954_v7 = vpack.i.bf16 %v3628_v51, %v3626_v5  ;;  %v788_v44 = vadd.s32 112, %v3480_v36 }
 0x24e   : > { %2925 = vrot.lane.b32.xlu0 %v2924_v15, %s3204_s21  ;;  %v1082_v46 = vsel %vm1074_vm0, %v4451_v31, %v1066_v34  ;;  %v3938_v61 = vsel %vm1074_vm0, %v1066_v34, %v1067_v39  ;;  %v1068_v0 = vrot.slane %v3469_v38, 7  ;;  %v2974_v5 = vpack.i.bf16 %v3463_v13, %v3459_v6  ;;  %v2856_v31 = vpop.permute.xlu0 %2855 }
 0x24f   : > { %v3940_v56 = vsel %vm1046_vm1, %v1082_v46, 0.0  ;;  %v1069_v51 = vrot.slane %v3473_v41, 7  ;;  %v1070_v16 = vrot.slane %v3467_v32, 7  ;;  %v4452_v22 = vrot.slane %v3471_v40, 7 }
 0x250   : > { %2935 = vrot.lane.b32.xlu1 %v2934_v49, %s3203_s19  ;;  %v2964_v23 = vpack.i.bf16 %v3938_v61, %v3940_v56  ;;  %v3034_v34 = vpack.i.bf16 %v3471_v40, %v3467_v32 }
 0x251   : > { %v3962_v12 = vsel %vm1074_vm0, %v1068_v0, %v1069_v51  ;;  %v1078_v37 = vsel %vm1074_vm0, %v1069_v51, %v1070_v16  ;;  %v1077_v62 = vsel %vm1074_vm0, %v1070_v16, %v4452_v22  ;;  %v798_v16 = vand.u32 15, %v3480_v36 }
 0x252   : > { %2945 = vrot.lane.b32.xlu0 %v2944_v26, %s3203_s19  ;;  %v2861_v29 = vpop.permute.xlu0 %2860 }
 0x254   : > { %2940 = vrot.lane.b32.xlu1 %v3587_v50, %s3204_s21  ;;  %v896_v50 = vand.u32 15, %v788_v44  ;;  %v2886_v44 = vpop.permute.xlu1 %2885 }
 0x256   : > { %2955 = vrot.lane.b32.xlu0 %v2954_v7, %s3202_s23  ;;  %vm1048_vm8 = vcmp.ne.s32.totalorder %v896_v50, 0 }
 0x258   : > { %2950 = vrot.lane.b32.xlu1 %v3651_v19, %s3203_s19  ;;  %v1080_v19 = vsel %vm1074_vm0, %v1067_v39, %v1068_v0  ;;  %v4034_v50 = vpop.permute.xlu1 %2895  ;;  %vm4047_vm0 = vcmp.ne.s32.totalorder %v798_v16, 0 }
 0x259   : > { %v3964_v18 = vsel %vm1048_vm8, %v1080_v19, 0.0 }
 0x25a   : > { %2965 = vrot.lane.b32.xlu0 %v2964_v23, %s3204_s21  ;;  %v2994_v45 = vpack.i.bf16 %v3962_v12, %v3964_v18 }
 0x25c   : > { %2960 = vrot.lane.b32.xlu1 %v3664_v43, %s3202_s23  ;;  %v790_v43 = vadd.s32 128, %v3480_v36 }
 0x25e   : > { %2975 = vrot.lane.b32.xlu0 %v2974_v5, %s3203_s19  ;;  %v910_v8 = vand.u32 15, %v790_v43  ;;  %v2858_v43 = vunpack.i.h.bf16 %v2856_v31 }
 0x260   : > { %2970 = vrot.lane.b32.xlu1 %v3808_v24, %s3204_s21  ;;  %v3004_v24 = vpack.i.bf16 %v3473_v41, %v3469_v38  ;;  %vm1050_vm9 = vcmp.ne.s32.totalorder %v910_v8, 0 }
 0x261   : > { %v1151_v49 = vsel %vm1050_vm9, %v1078_v37, 0.0  ;;  %v2862_v37 = vunpack.i.l.bf16 %v2861_v29 }
 0x262   : > { %2985 = vrot.lane.b32.xlu0 %v3688_v1, %s3202_s23  ;;  %v3024_v30 = vpack.i.bf16 %v1077_v62, %v1151_v49 }
 0x264   : > { %2980 = vrot.lane.b32.xlu1 %v2924_v15, %s3203_s19  ;;  %v3014_v15 = vpack.i.bf16 %v3680_v20, %v3676_v9  ;;  %v4004_v9 = vpop.f32.mrb[4].mxu1 }
 0x265   : > { %v4006_v20 = vpop.f32.mrb[5].mxu1 }
 0x266   : > { %2995 = vrot.lane.b32.xlu0 %v2994_v45, %s3204_s21 }
 0x268   : > { %2990 = vrot.lane.b32.xlu1 %v2944_v26, %s3202_s23  ;;  %v4008_v26 = vpop.f32.mrb[6].mxu1 }
 0x269   : > { %v4010_v39 = vpop.f32.mrb[7].mxu1 }
 0x26a   : > { %3005 = vrot.lane.b32.xlu0 %v3004_v24, %s3203_s19 }
 0x26c   : > { %3000 = vrot.lane.b32.xlu1 %v2954_v7, %s3204_s21 }
 0x26e   : > { %3015 = vrot.lane.b32.xlu0 %v3014_v15, %s3202_s23 }
 0x270   : > { %3010 = vrot.lane.b32.xlu1 %v2964_v23, %s3203_s19 }
 0x272   : > { %3025 = vrot.lane.b32.xlu0 %v3024_v30, %s3204_s21 }
 0x274   : > { %3020 = vrot.lane.b32.xlu1 %v2974_v5, %s3202_s23  ;;  %v4036_v5 = vpop.permute.xlu1 %2905 }
 0x276   : > { %3035 = vrot.lane.b32.xlu0 %v3034_v34, %s3203_s19 }
 0x278   : > { %3030 = vrot.lane.b32.xlu1 %v3688_v1, %s3204_s21  ;;  %v4040_v19 = vpop.permute.xlu1 %2920 }
 0x27a   : > { %3045 = vrot.lane.b32.xlu0 %v3044_v58, %s3202_s23  ;;  %v4017_v58 = vpop.f32.mrb[8].mxu1 }
 0x27b   : > { %4453 = vst [vmem:[#allocation38_spill] sm:$0xff] %v4017_v58  ;;  %v4019_v1 = vpop.f32.mrb[9].mxu1 }
 0x27c   : > { %3040 = vrot.lane.b32.xlu1 %v2994_v45, %s3203_s19  ;;  %v4021_v53 = vpop.f32.mrb[10].mxu1  ;;  %v2857_v45 = vunpack.i.l.bf16 %v2856_v31 }
 0x27d   : > { %4454 = vst [vmem:[#allocation39_spill] sm:$0xff] %v4021_v53  ;;  %v4023_v33 = vpop.f32.mrb[11].mxu1 }
 0x27e   : > { %3055 = vrot.lane.b32.xlu0 %v3893_v21, %s3204_s21  ;;  %v4026_v21 = vpop.f32.mrb[12].mxu1  ;;  %v1673_v22 = vsel %vm1620_vm7, %v3443_v42, %v2857_v45  ;;  %v1135_v45 = vsel %vm4047_vm0, %v3903_v63, 0.0 }
 0x27f   : > { %4455 = vst [vmem:[#allocation40_spill] sm:$0xff] %v4026_v21  ;;  %v4028_v46 = vpop.f32.mrb[13].mxu1 }
 0x280   : > { %3050 = vrot.lane.b32.xlu1 %v3004_v24, %s3202_s23  ;;  %4456 = vst [vmem:[#allocation41_spill] sm:$0xff] %v4028_v46  ;;  %v4030_v7 = vpop.f32.mrb[14].mxu1  ;;  %v2863_v24 = vunpack.i.h.bf16 %v2861_v29  ;;  %v1689_v29 = vsel %vm1637_vm13, %v1673_v22, %v2862_v37  ;;  %s3205_s23 = smov [#allocation4]  }
 0x281   : > { %4457 = vst [vmem:[#allocation42_spill] sm:$0xff] %v4030_v7  ;;  %v4032_v48 = vpop.f32.mrb[15].mxu1 }
 0x282   : > { %3065 = vrot.lane.b32.xlu0 %v3064_v2, %s3203_s19  ;;  %4458 = vst [vmem:[#allocation43_spill] sm:$0xff] %v4032_v48  ;;  %v2866_v2 = vpop.permute.xlu0 %2865 }
 0x283   : > { %v2868_v31 = vunpack.i.h.bf16 %v2866_v2  ;;  %v2867_v7 = vunpack.i.l.bf16 %v2866_v2 }
 0x284   : > { %3060 = vrot.lane.b32.xlu1 %v3014_v15, %s3204_s21  ;;  %v1674_v15 = vsel %vm1620_vm7, %v3447_v47, %v2858_v43  ;;  %v2888_v47 = vunpack.i.h.bf16 %v2886_v44  ;;  %v2887_v43 = vunpack.i.l.bf16 %v2886_v44 }
 0x285   : > { %v1690_v48 = vsel %vm1637_vm13, %v1674_v15, %v2863_v24  ;;  %v1705_v44 = vsel %vm1654_vm14, %v1689_v29, %v2867_v7  ;;  %v2898_v7 = vunpack.i.h.bf16 %v4034_v50 }
 0x286   : > { %v2881_v23 = vpop.permute.xlu0 %2880 }
 0x287   : > { %v2883_v46 = vunpack.i.h.bf16 %v2881_v23  ;;  %v2882_v42 = vunpack.i.l.bf16 %v2881_v23  ;;  %v1706_v23 = vsel %vm1654_vm14, %v1690_v48, %v2868_v31  ;;  %v2897_v48 = vunpack.i.l.bf16 %v4034_v50 }
 0x288   : > { %3070 = vrot.lane.b32.xlu1 %v3024_v30, %s3203_s19  ;;  %s3106_s19 = sshll.u32 %s3205_s23, 4  ;;  %s3107_s19 = int_to_ptr.vmem [resolvable:$false] %s3106_s19 }
 0x289   : > { %s3108_s21 = scalar_lea.vmem %s3107_s19, 4096  ;;  %p3109_p9 = scmp.lt.s32.totalorder %s4292_s30, %s3107_s19 }
 0x28a   : > { %v2891_v0 = vpop.permute.xlu0 %2890  ;;  %p3110_p10 = scmp.lt.s32.totalorder %s3108_s21, %s3102_s29 }
 0x28b   : > { %v2893_v15 = vunpack.i.h.bf16 %v2891_v0  ;;  %v2892_v22 = vunpack.i.l.bf16 %v2891_v0 }
 0x28c   : > { %p3111_p11 = por %p3110_p10, %p3109_p9 }
 0x28e   : > { %v4038_v51 = vpop.permute.xlu0 %2900  ;;  %p3112_p12 = pnand %p3111_p11, %p3105_p7 }
 0x28f   : > { %v2903_v0 = vunpack.i.h.bf16 %v4038_v51 }
 0x2b8   : > { %v2911_v8 = vpop.permute.xlu0 %2910 }
 0x2b9   : > { %v2913_v34 = vunpack.i.h.bf16 %v2911_v8  ;;  %v2912_v35 = vunpack.i.l.bf16 %v2911_v8 }
 0x2bb   : > { %v1621_v8 = vsel %vm1620_vm7, %v1135_v45, %v2912_v35  ;;  %v1622_v2 = vsel %vm1620_vm7, %v3899_v3, %v2913_v34  ;;  %v1676_v35 = vsel %vm1620_vm7, %v3457_v60, %v2883_v46  ;;  %v1675_v3 = vsel %vm1620_vm7, %v3453_v57, %v2882_v42 }
 0x2bc   : > { %v2916_v62 = vpop.permute.xlu0 %2915  ;;  %v1626_v60 = vsel %vm1620_vm7, %v3510_v10, %v2888_v47  ;;  %v1625_v57 = vsel %vm1620_vm7, %v3518_v25, %v2887_v43  ;;  %v1691_v46 = vsel %vm1637_vm13, %v1675_v3, %v2892_v22  ;;  %v1692_v31 = vsel %vm1637_vm13, %v1676_v35, %v2893_v15 }
 0x2bd   : > { %v2918_v29 = vunpack.i.h.bf16 %v2916_v62  ;;  %v2917_v42 = vunpack.i.l.bf16 %v2916_v62  ;;  %v1708_v10 = vsel %vm1654_vm14, %v1692_v31, %v2903_v0  ;;  %v2908_v47 = vunpack.i.h.bf16 %v4036_v5 }
 0x2be   : > { %v2931_v49 = vpop.permute.xlu1 %2930  ;;  %v2907_v25 = vunpack.i.l.bf16 %v4036_v5 }
 0x2bf   : > { %v2933_v21 = vunpack.i.h.bf16 %v2931_v49  ;;  %v2932_v36 = vunpack.i.l.bf16 %v2931_v49  ;;  %v1677_v62 = vsel %vm1620_vm7, %v3451_v54, %v2917_v42 }
 0x2c0   : > { %v2926_v16 = vpop.permute.xlu0 %2925 }
 0x2c1   : > { %v1638_v37 = vsel %vm1637_vm13, %v1621_v8, %v2932_v36  ;;  %v1639_v24 = vsel %vm1637_vm13, %v1622_v2, %v2933_v21  ;;  %v1723_v36 = vpack.c.bf16 %v1706_v23, %v1705_v44  ;;  %v1642_v8 = vsel %vm1637_vm13, %v1625_v57, %v2897_v48 }
 0x2c2   : > { %v2936_v53 = vpop.permute.xlu1 %2935  ;;  %v2928_v43 = vunpack.i.h.bf16 %v2926_v16 }
 0x2c3   : > { %v2938_v49 = vunpack.i.h.bf16 %v2936_v53  ;;  %v2937_v58 = vunpack.i.l.bf16 %v2936_v53 }
 0x2c4   : > { %v2946_v53 = vpop.permute.xlu0 %2945 }
 0x2c5   : > { %v1655_v63 = vsel %vm1654_vm14, %v1638_v37, %v2937_v58  ;;  %v1656_v30 = vsel %vm1654_vm14, %v1639_v24, %v2938_v49  ;;  %v2902_v58 = vunpack.i.l.bf16 %v4038_v51  ;;  %v1643_v51 = vsel %vm1637_vm13, %v1626_v60, %v2898_v7 }
 0x2c6   : > { %v4069_v34 = vpop.permute.xlu1 %2940  ;;  %v1719_v21 = vpack.c.bf16 %v1656_v30, %v1655_v63  ;;  %v2927_v49 = vunpack.i.l.bf16 %v2926_v16  ;;  %v1678_v37 = vsel %vm1620_vm7, %v3455_v59, %v2918_v29  ;;  %v2948_v24 = vunpack.i.h.bf16 %v2946_v53 }
 0x2c7   : > { %v1707_v2 = vsel %vm1654_vm14, %v1691_v46, %v2902_v58  ;;  %v2947_v44 = vunpack.i.l.bf16 %v2946_v53  ;;  %v4461_v63 = vpack.c.bf16 %v3836_v27, %v3916_v17  ;;  %v1694_v16 = vsel %vm1637_vm13, %v1678_v37, %v2928_v43 }
 0x2c8   : > { %1951 = vmatmul.mubr.bf16.vlgmr.msra.gmra.mrb[16].mxu0 %v1719_v21  ;;  %v2956_v45 = vpop.permute.xlu0 %2955  ;;  %v1726_v22 = vpack.c.bf16 %v1708_v10, %v1707_v2  ;;  %v1693_v5 = vsel %vm1637_vm13, %v1677_v62, %v2927_v49  ;;  %v1659_v59 = vsel %vm1654_vm14, %v1642_v8, %v2907_v25  ;;  %v1660_v30 = vsel %vm1654_vm14, %v1643_v51, %v2908_v47 }
 0x2c9   : > { %1958 = vmatprep.mubr.bf16.mxu0 %v1723_v36  ;;  %v1709_v3 = vsel %vm1654_vm14, %v1693_v5, %v2947_v44  ;;  %v1710_v53 = vsel %vm1654_vm14, %v1694_v16, %v2948_v24  ;;  %v2958_v21 = vunpack.i.h.bf16 %v2956_v45  ;;  %v2957_v36 = vunpack.i.l.bf16 %v2956_v45 }
 0x2ca   : > { %v2951_v50 = vpop.permute.xlu1 %2950  ;;  %v2923_v27 = vunpack.i.h.bf16 %v4040_v19  ;;  %v1725_v17 = vpack.c.bf16 %v1660_v30, %v1659_v59  ;;  %v2922_v7 = vunpack.i.l.bf16 %v4040_v19  ;;  %v2943_v48 = vunpack.i.h.bf16 %v4069_v34 }
 0x2cb   : > { %v2942_v0 = vunpack.i.l.bf16 %v4069_v34  ;;  %v1729_v58 = vpack.c.bf16 %v1710_v53, %v1709_v3  ;;  %v2953_v60 = vunpack.i.h.bf16 %v2951_v50  ;;  %v2952_v57 = vunpack.i.l.bf16 %v2951_v50 }
 0x2cc   : > { %v2966_v23 = vpop.permute.xlu0 %2965  ;;  %v1680_v8 = vsel %vm1620_vm7, %v3465_v14, %v2958_v21  ;;  %v1679_v45 = vsel %vm1620_vm7, %v3461_v11, %v2957_v36  ;;  %v1628_v19 = vsel %vm1620_vm7, %v3548_v55, %v2923_v27  ;;  %v1627_v34 = vsel %vm1620_vm7, %v3552_v4, %v2922_v7  ;;  %v4463_v7 = vld [vmem:[#allocation37_spill] sm:$0xff] }
 0x2cd   : > { %v2968_v46 = vunpack.i.h.bf16 %v2966_v23  ;;  %v2967_v31 = vunpack.i.l.bf16 %v2966_v23  ;;  %v1645_v50 = vsel %vm1637_vm13, %v1628_v19, %v2943_v48  ;;  %v1644_v10 = vsel %vm1637_vm13, %v1627_v34, %v2942_v0 }
 0x2ce   : > { %v4091_v15 = vpop.permute.xlu1 %2960  ;;  %v1661_v43 = vsel %vm1654_vm14, %v1644_v10, %v2952_v57  ;;  %v1662_v49 = vsel %vm1654_vm14, %v1645_v50, %v2953_v60 }
 0x2cf   : > { %v1695_v47 = vsel %vm1637_vm13, %v1679_v45, %v2967_v31  ;;  %v1696_v14 = vsel %vm1637_vm13, %v1680_v8, %v2968_v46  ;;  %v2963_v24 = vunpack.i.h.bf16 %v4091_v15  ;;  %v2962_v44 = vunpack.i.l.bf16 %v4091_v15  ;;  %v4462_v15 = vld [vmem:[#allocation36_spill] sm:$0xff] }
 0x2d0   : > { %1959 = vmatmul.mubr.bf16.gmra.mrb[20].mxu0 %v4461_v63  ;;  %v2976_v54 = vpop.permute.xlu0 %2975  ;;  %v1728_v16 = vpack.c.bf16 %v1662_v49, %v1661_v43 }
 0x2d1   : > { %1966 = vmatprep.mubr.bf16.mxu0 %v1726_v22  ;;  %v2978_v51 = vunpack.i.h.bf16 %v2976_v54  ;;  %v2977_v2 = vunpack.i.l.bf16 %v2976_v54  ;;  %v1629_v48 = vsel %vm1620_vm7, %v4463_v7, %v2962_v44 }
 0x2d2   : > { %v2971_v35 = vpop.permute.xlu1 %2970 }
 0x2d3   : > { %v1711_v55 = vsel %vm1654_vm14, %v1695_v47, %v2977_v2  ;;  %v1712_v37 = vsel %vm1654_vm14, %v1696_v14, %v2978_v51  ;;  %v2973_v23 = vunpack.i.h.bf16 %v2971_v35  ;;  %v2972_v22 = vunpack.i.l.bf16 %v2971_v35 }
 0x2d4   : > { %v2986_v29 = vpop.permute.xlu0 %2985  ;;  %v1732_v59 = vpack.c.bf16 %v1712_v37, %v1711_v55  ;;  %v1630_v35 = vsel %vm1620_vm7, %v4462_v15, %v2963_v24 }
 0x2d5   : > { %v2988_v4 = vunpack.i.h.bf16 %v2986_v29  ;;  %v2987_v62 = vunpack.i.l.bf16 %v2986_v29  ;;  %v1646_v0 = vsel %vm1637_vm13, %v1629_v48, %v2972_v22 }
 0x2d6   : > { %v2981_v42 = vpop.permute.xlu1 %2980 }
 0x2d7   : > { %v2983_v30 = vunpack.i.h.bf16 %v2981_v42  ;;  %v2982_v54 = vunpack.i.l.bf16 %v2981_v42  ;;  %v1682_v21 = vsel %vm1620_vm7, %v3463_v13, %v2988_v4  ;;  %v1681_v36 = vsel %vm1620_vm7, %v3459_v6, %v2987_v62 }
 0x2d8   : > { %1967 = vmatmul.mubr.bf16.gmra.mrb[24].mxu0 %v1725_v17  ;;  %v2996_v25 = vpop.permute.xlu0 %2995 }
 0x2d9   : > { %1974 = vmatprep.mubr.bf16.mxu0 %v1729_v58  ;;  %v2998_v3 = vunpack.i.h.bf16 %v2996_v25  ;;  %v2997_v53 = vunpack.i.l.bf16 %v2996_v25  ;;  %v1647_v58 = vsel %vm1637_vm13, %v1630_v35, %v2973_v23  ;;  %v1663_v46 = vsel %vm1654_vm14, %v1646_v0, %v2982_v54 }
 0x2da   : > { %v2991_v11 = vpop.permute.xlu1 %2990  ;;  %v1664_v31 = vsel %vm1654_vm14, %v1647_v58, %v2983_v30 }
 0x2db   : > { %v1697_v13 = vsel %vm1637_vm13, %v1681_v36, %v2997_v53  ;;  %v1698_v6 = vsel %vm1637_vm13, %v1682_v21, %v2998_v3  ;;  %v2993_v8 = vunpack.i.h.bf16 %v2991_v11  ;;  %v2992_v45 = vunpack.i.l.bf16 %v2991_v11 }
 0x2dc   : > { %v3006_v63 = vpop.permute.xlu0 %3005  ;;  %v1731_v47 = vpack.c.bf16 %v1664_v31, %v1663_v46 }
 0x2dd   : > { %v3008_v27 = vunpack.i.h.bf16 %v3006_v63  ;;  %v3007_v17 = vunpack.i.l.bf16 %v3006_v63  ;;  %v1632_v37 = vsel %vm1620_vm7, %v3821_v28, %v2993_v8  ;;  %v1631_v4 = vsel %vm1620_vm7, %v3833_v52, %v2992_v45 }
 0x2de   : > { %v3001_v5 = vpop.permute.xlu1 %3000 }
 0x2df   : > { %v1713_v29 = vsel %vm1654_vm14, %v1697_v13, %v3007_v17  ;;  %v1714_v42 = vsel %vm1654_vm14, %v1698_v6, %v3008_v27  ;;  %v3003_v19 = vunpack.i.h.bf16 %v3001_v5  ;;  %v3002_v34 = vunpack.i.l.bf16 %v3001_v5 }
 0x2e0   : > { %1975 = vmatmul.mubr.bf16.gmra.mrb[28].mxu0 %v1728_v16  ;;  %v3016_v60 = vpop.permute.xlu0 %3015  ;;  %v1735_v43 = vpack.c.bf16 %v1714_v42, %v1713_v29 }
 0x2e1   : > { %1982 = vmatprep.mubr.bf16.mxu0 %v1732_v59  ;;  %v3018_v51 = vunpack.i.h.bf16 %v3016_v60  ;;  %v3017_v2 = vunpack.i.l.bf16 %v3016_v60  ;;  %v1648_v24 = vsel %vm1637_vm13, %v1631_v4, %v3002_v34  ;;  %v1649_v44 = vsel %vm1637_vm13, %v1632_v37, %v3003_v19 }
 0x2e2   : > { %v3011_v57 = vpop.permute.xlu1 %3010 }
 0x2e3   : > { %v3013_v14 = vunpack.i.h.bf16 %v3011_v57  ;;  %v3012_v25 = vunpack.i.l.bf16 %v3011_v57  ;;  %v1684_v11 = vsel %vm1620_vm7, %v3473_v41, %v3018_v51  ;;  %v1683_v62 = vsel %vm1620_vm7, %v3469_v38, %v3017_v2 }
 0x2e4   : > { %v3026_v50 = vpop.permute.xlu0 %3025 }
 0x2e5   : > { %v3028_v49 = vunpack.i.h.bf16 %v3026_v50  ;;  %v3027_v55 = vunpack.i.l.bf16 %v3026_v50  ;;  %v1665_v28 = vsel %vm1654_vm14, %v1648_v24, %v3012_v25  ;;  %v1666_v16 = vsel %vm1654_vm14, %v1649_v44, %v3013_v14 }
 0x2e6   : > { %v3021_v10 = vpop.permute.xlu1 %3020  ;;  %v1734_v27 = vpack.c.bf16 %v1666_v16, %v1665_v28  ;;  %v3100_v28 = vld [vmem:[%s4360_s4] sm:$0xff]   ;;  %v3101_v16 = vld [vmem:[%s4360_s4 + $0x8] sm:$0xff]  }
 0x2e7   : > { %v1699_v52 = vsel %vm1637_vm13, %v1683_v62, %v3027_v55  ;;  %v1700_v41 = vsel %vm1637_vm13, %v1684_v11, %v3028_v49  ;;  %v3023_v59 = vunpack.i.h.bf16 %v3021_v10  ;;  %v3022_v30 = vunpack.i.l.bf16 %v3021_v10  ;;  %2730 = vmatprep.subr.bf16.mxu1 %v3100_v28 }
 0x2e8   : > { %1983 = vmatmul.mubr.bf16.gmra.mrb[32].mxu0 %v1731_v47  ;;  %v3036_v23 = vpop.permute.xlu0 %3035  ;;  %2731 = vmatpush3.bf16.msra.mxu1 %v3100_v28 }
 0x2e9   : > { %1990 = vmatprep.mubr.bf16.mxu0 %v1735_v43  ;;  %v3038_v63 = vunpack.i.h.bf16 %v3036_v23  ;;  %v3037_v5 = vunpack.i.l.bf16 %v3036_v23  ;;  %v1634_v7 = vsel %vm1620_vm7, %v3938_v61, %v3023_v59  ;;  %v1633_v48 = vsel %vm1620_vm7, %v3940_v56, %v3022_v30  ;;  %2732 = vmatprep.subr.bf16.mxu1 %v3101_v16 }
 0x2ea   : > { %v3031_v22 = vpop.permute.xlu1 %3030 }
 0x2eb   : > { %v1715_v38 = vsel %vm1654_vm14, %v1699_v52, %v3037_v5  ;;  %v1716_v54 = vsel %vm1654_vm14, %v1700_v41, %v3038_v63  ;;  %v3033_v3 = vunpack.i.h.bf16 %v3031_v22  ;;  %v3032_v53 = vunpack.i.l.bf16 %v3031_v22  ;;  %v4197_v41 = vld [vmem:[%s4362_s6] ss:$0 sm:$0xff] }
 0x2ec   : > { %v3046_v21 = vpop.permute.xlu0 %3045  ;;  %v1738_v17 = vpack.c.bf16 %v1716_v54, %v1715_v38  ;;  %2733 = vmatpush3.bf16.msra.mxu1 %v3101_v16 }
 0x2ed   : > { %v1650_v0 = vsel %vm1637_vm13, %v1633_v48, %v3032_v53  ;;  %v1651_v58 = vsel %vm1637_vm13, %v1634_v7, %v3033_v3  ;;  %v3048_v60 = vunpack.i.h.bf16 %v3046_v21  ;;  %v3047_v57 = vunpack.i.l.bf16 %v3046_v21 }
 0x2ee   : > { %v3041_v36 = vpop.permute.xlu1 %3040 }
 0x2ef   : > { %v3043_v15 = vunpack.i.h.bf16 %v3041_v36  ;;  %v3042_v35 = vunpack.i.l.bf16 %v3041_v36  ;;  %v1686_v61 = vsel %vm1620_vm7, %v3471_v40, %v3048_v60  ;;  %v1685_v56 = vsel %vm1620_vm7, %v3467_v32, %v3047_v57 }
 0x2f0   : > { %1991 = vmatmul.mubr.bf16.gmra.mrb[36].mxu0 %v1734_v27  ;;  %v3056_v13 = vpop.permute.xlu0 %3055 }
 0x2f1   : > { %1998 = vmatprep.mubr.bf16.mxu0 %v1738_v17  ;;  %v1667_v46 = vsel %vm1654_vm14, %v1650_v0, %v3042_v35  ;;  %v1668_v31 = vsel %vm1654_vm14, %v1651_v58, %v3043_v15  ;;  %v3058_v29 = vunpack.i.h.bf16 %v3056_v13  ;;  %v3057_v42 = vunpack.i.l.bf16 %v3056_v13 }
 0x2f2   : > { %v3051_v6 = vpop.permute.xlu1 %3050  ;;  %v1737_v51 = vpack.c.bf16 %v1668_v31, %v1667_v46 }
 0x2f3   : > { %v3053_v2 = vunpack.i.h.bf16 %v3051_v6  ;;  %v3052_v19 = vunpack.i.l.bf16 %v3051_v6  ;;  %v1701_v10 = vsel %vm1637_vm13, %v1685_v56, %v3057_v42  ;;  %v1702_v47 = vsel %vm1637_vm13, %v1686_v61, %v3058_v29 }
 0x2f4   : > { %v3066_v8 = vpop.permute.xlu0 %3065 }
 0x2f5   : > { %v3068_v34 = vunpack.i.h.bf16 %v3066_v8  ;;  %v3067_v50 = vunpack.i.l.bf16 %v3066_v8  ;;  %v1636_v55 = vsel %vm1620_vm7, %v3962_v12, %v3053_v2  ;;  %v1635_v37 = vsel %vm1620_vm7, %v3964_v18, %v3052_v19 }
 0x2f6   : > { %v3061_v45 = vpop.permute.xlu1 %3060 }
 0x2f7   : > { %v3063_v14 = vunpack.i.h.bf16 %v3061_v45  ;;  %v3062_v25 = vunpack.i.l.bf16 %v3061_v45  ;;  %v1717_v43 = vsel %vm1654_vm14, %v1701_v10, %v3067_v50  ;;  %v1718_v40 = vsel %vm1654_vm14, %v1702_v47, %v3068_v34 }
 0x2f8   : > { %1999 = vmatmul.mubr.bf16.gmra.mrb[40].mxu0 %v1737_v51  ;;  %v1741_v32 = vpack.c.bf16 %v1718_v40, %v1717_v43 }
 0x2f9   : > { %v1652_v62 = vsel %vm1637_vm13, %v1635_v37, %v3062_v25  ;;  %v1653_v24 = vsel %vm1637_vm13, %v1636_v55, %v3063_v14  ;;  %v4464_v55 = vld [vmem:[#allocation38_spill] sm:$0xff] }
 0x2fa   : > { %v3071_v49 = vpop.permute.xlu1 %3070  ;;  %2006 = vmatprep.mubr.bf16.mxu0 %v1741_v32 }
 0x2fb   : > { %v3073_v4 = vunpack.i.h.bf16 %v3071_v49  ;;  %v3072_v11 = vunpack.i.l.bf16 %v3071_v49 }
 0x2fd   : > { %v1669_v44 = vsel %vm1654_vm14, %v1652_v62, %v3072_v11  ;;  %v1670_v23 = vsel %vm1654_vm14, %v1653_v24, %v3073_v4  ;;  %v4465_v4 = vld [vmem:[#allocation39_spill] sm:$0xff] }
 0x2fe   : > { %v1740_v22 = vpack.c.bf16 %v1670_v23, %v1669_v44 }
 0x300   : > { %2007 = vmatmul.mubr.bf16.gmra.mrb[44].mxu0 %v1740_v22 }
 0x31c   : > { %v4180_v63 = vpop.f32.mrb[16].mxu1 }
 0x31d   : > { %v4182_v5 = vpop.f32.mrb[17].mxu1 }
 0x31e   : > { %v4184_v12 = vpop.f32.mrb[18].mxu1 }
 0x31f   : > { %v4186_v18 = vpop.f32.mrb[19].mxu1 }
 0x39b   : > { %v2590_v52 = vpop.f32.mrb[16].mxu0 }
 0x39c   : > { %v2591_v59 = vpop.f32.mrb[17].mxu0 }
 0x39d   : > { %v2592_v30 = vadd.f32 %v2591_v59, %v2590_v52  ;;  %v2593_v38 = vpop.f32.mrb[18].mxu0 }
 0x39e   : > { %v2594_v54 = vpop.f32.mrb[19].mxu0 }
 0x39f   : > { %v1953_v3 = vadd.f32 %v2592_v30, %v4197_v41  ;;  %v2595_v53 = vadd.f32 %v2594_v54, %v2593_v38  ;;  %v4466_v30 = vld [vmem:[#allocation41_spill] sm:$0xff] }
 0x3a1   : > { %v2050_v21 = vadd.f32 %v4006_v20, %v1953_v3  ;;  %v1956_v36 = vadd.f32 %v2595_v53, %v4197_v41  ;;  %v4467_v3 = vld [vmem:[#allocation43_spill] sm:$0xff] }
 0x3a3   : > { %v2053_v27 = vadd.f32 %v4010_v39, %v1956_v36  ;;  %v2596_v17 = vpop.f32.mrb[20].mxu0  ;;  %v2112_v35 = vmax.f32 %v2050_v21, 0.0 }
 0x3a4   : > { %v2597_v15 = vpop.f32.mrb[21].mxu0 }
 0x3a5   : > { %v2113_v7 = vmax.f32 %v2053_v27, 0.0  ;;  %v2598_v48 = vadd.f32 %v2597_v15, %v2596_v17  ;;  %v2599_v0 = vpop.f32.mrb[22].mxu0 }
 0x3a6   : > { %v2600_v58 = vpop.f32.mrb[23].mxu0 }
 0x3a7   : > { %v2128_v60 = vpack.c.bf16 %v2113_v7, %v2112_v35  ;;  %v1961_v57 = vadd.f32 %v2598_v48, %v4197_v41  ;;  %v2601_v13 = vadd.f32 %v2600_v58, %v2599_v0 }
 0x3a9   : > { %v2058_v6 = vadd.f32 %v4004_v9, %v1961_v57  ;;  %v1964_v46 = vadd.f32 %v2601_v13, %v4197_v41  ;;  %2734 = vmatprep.mubr.msk.bf16.mxu1 %vm1620_vm7, %v2128_v60  ;;  %v4468_v60 = vld [vmem:[#allocation40_spill] sm:$0xff] }
 0x3ab   : > { %v2061_v20 = vadd.f32 %v4008_v26, %v1964_v46  ;;  %v2602_v39 = vpop.f32.mrb[24].mxu0  ;;  %v2114_v29 = vmax.f32 %v2058_v6, 0.0  ;;  %v4469_v6 = vld [vmem:[#allocation42_spill] sm:$0xff] }
 0x3ac   : > { %v2603_v31 = vpop.f32.mrb[25].mxu0 }
 0x3ad   : > { %v2115_v42 = vmax.f32 %v2061_v20, 0.0  ;;  %v2604_v61 = vadd.f32 %v2603_v31, %v2602_v39  ;;  %v2605_v56 = vpop.f32.mrb[26].mxu0 }
 0x3ae   : > { %v2606_v8 = vpop.f32.mrb[27].mxu0 }
 0x3af   : > { %v2129_v45 = vpack.c.bf16 %v2115_v42, %v2114_v29  ;;  %v1969_v51 = vadd.f32 %v2604_v61, %v4197_v41  ;;  %v2607_v2 = vadd.f32 %v2606_v8, %v2605_v56 }
 0x3b1   : > { %v2066_v19 = vadd.f32 %v4019_v1, %v1969_v51  ;;  %v1972_v9 = vadd.f32 %v2607_v2, %v4197_v41  ;;  %2735 = vmatmul.mubr.msk.bf16.vlgmr.msra.gmra.mrb[20].mxu1 %vm1620_vm7, %v2129_v45 }
 0x3b3   : > { %v2069_v34 = vadd.f32 %v4023_v33, %v1972_v9  ;;  %v2608_v26 = vpop.f32.mrb[28].mxu0  ;;  %v2116_v10 = vmax.f32 %v2066_v19, 0.0 }
 0x3b4   : > { %v2609_v50 = vpop.f32.mrb[29].mxu0 }
 0x3b5   : > { %v2117_v47 = vmax.f32 %v2069_v34, 0.0  ;;  %v2610_v14 = vadd.f32 %v2609_v50, %v2608_v26  ;;  %v2611_v25 = vpop.f32.mrb[30].mxu0 }
 0x3b6   : > { %v2612_v43 = vpop.f32.mrb[31].mxu0 }
 0x3b7   : > { %v2130_v40 = vpack.c.bf16 %v2117_v47, %v2116_v10  ;;  %v1977_v49 = vadd.f32 %v2610_v14, %v4197_v41  ;;  %v2613_v32 = vadd.f32 %v2612_v43, %v2611_v25 }
 0x3b9   : > { %v2074_v37 = vadd.f32 %v4464_v55, %v1977_v49  ;;  %v1980_v1 = vadd.f32 %v2613_v32, %v4197_v41  ;;  %2738 = vmatprep.mubr.msk.bf16.mxu1 %vm1620_vm7, %v2130_v40 }
 0x3bb   : > { %v2077_v11 = vadd.f32 %v4465_v4, %v1980_v1  ;;  %v2614_v33 = vpop.f32.mrb[32].mxu0  ;;  %v2118_v24 = vmax.f32 %v2074_v37, 0.0  ;;  %v4242_v4 = vld [vmem:[%s4363_s7] ss:$0 sm:$0xff] }
 0x3bc   : > { %v2615_v62 = vpop.f32.mrb[33].mxu0 }
 0x3bd   : > { %v2119_v44 = vmax.f32 %v2077_v11, 0.0  ;;  %v2616_v23 = vadd.f32 %v2615_v62, %v2614_v33  ;;  %v2617_v22 = vpop.f32.mrb[34].mxu0  ;;  %v4470_v62 = vld [vmem:[#allocation22_spill] sm:$0xff] }
 0x3be   : > { %v2618_v28 = vpop.f32.mrb[35].mxu0 }
 0x3bf   : > { %v2131_v16 = vpack.c.bf16 %v2119_v44, %v2118_v24  ;;  %v1985_v52 = vadd.f32 %v2616_v23, %v4197_v41  ;;  %v2619_v59 = vadd.f32 %v2618_v28, %v2617_v22  ;;  %v4471_v22 = vld [vmem:[#allocation20_spill] sm:$0xff] }
 0x3c1   : > { %v2082_v38 = vadd.f32 %v4466_v30, %v1985_v52  ;;  %v1988_v54 = vadd.f32 %v2619_v59, %v4197_v41  ;;  %2739 = vmatmul.mubr.msk.bf16.gmra.mrb[24].mxu1 %vm1620_vm7, %v2131_v16  ;;  %v4472_v59 = vld [vmem:[#allocation23_spill] sm:$0xff] }
 0x3c3   : > { %v2085_v53 = vadd.f32 %v4467_v3, %v1988_v54  ;;  %v2620_v21 = vpop.f32.mrb[36].mxu0  ;;  %v2120_v27 = vmax.f32 %v2082_v38, 0.0  ;;  %v4473_v54 = vld [vmem:[#allocation21_spill] sm:$0xff] }
 0x3c4   : > { %v2621_v36 = vpop.f32.mrb[37].mxu0 }
 0x3c5   : > { %v2121_v17 = vmax.f32 %v2085_v53, 0.0  ;;  %v2622_v15 = vadd.f32 %v2621_v36, %v2620_v21  ;;  %v2623_v35 = vpop.f32.mrb[38].mxu0 }
 0x3c6   : > { %v2624_v7 = vpop.f32.mrb[39].mxu0 }
 0x3c7   : > { %v2132_v48 = vpack.c.bf16 %v2121_v17, %v2120_v27  ;;  %v1993_v0 = vadd.f32 %v2622_v15, %v4197_v41  ;;  %v2625_v58 = vadd.f32 %v2624_v7, %v2623_v35  ;;  %v4474_v7 = vld [vmem:[#allocation26_spill] sm:$0xff] }
 0x3c9   : > { %v2090_v57 = vadd.f32 %v4468_v60, %v1993_v0  ;;  %v1996_v13 = vadd.f32 %v2625_v58, %v4197_v41  ;;  %2742 = vmatprep.mubr.msk.bf16.mxu1 %vm1620_vm7, %v2132_v48  ;;  %v4475_v60 = vld [vmem:[#allocation24_spill] sm:$0xff] }
 0x3cb   : > { %v2093_v46 = vadd.f32 %v4469_v6, %v1996_v13  ;;  %v2626_v20 = vpop.f32.mrb[40].mxu0  ;;  %v2122_v31 = vmax.f32 %v2090_v57, 0.0 }
 0x3cc   : > { %v2627_v39 = vpop.f32.mrb[41].mxu0 }
 0x3cd   : > { %v2123_v29 = vmax.f32 %v2093_v46, 0.0  ;;  %v2628_v42 = vadd.f32 %v2627_v39, %v2626_v20  ;;  %v2629_v61 = vpop.f32.mrb[42].mxu0  ;;  %v4476_v46 = vld [vmem:[#allocation27_spill] sm:$0xff] }
 0x3ce   : > { %v2630_v56 = vpop.f32.mrb[43].mxu0 }
 0x3cf   : > { %v2133_v8 = vpack.c.bf16 %v2123_v29, %v2122_v31  ;;  %v2001_v45 = vadd.f32 %v2628_v42, %v4197_v41  ;;  %v2631_v51 = vadd.f32 %v2630_v56, %v2629_v61  ;;  %v4477_v31 = vld [vmem:[#allocation25_spill] sm:$0xff] }
 0x3d1   : > { %v2098_v2 = vadd.f32 %v4182_v5, %v2001_v45  ;;  %v2004_v19 = vadd.f32 %v2631_v51, %v4197_v41  ;;  %2743 = vmatmul.mubr.msk.bf16.gmra.mrb[28].mxu1 %vm1620_vm7, %v2133_v8 }
 0x3d3   : > { %v2101_v9 = vadd.f32 %v4186_v18, %v2004_v19  ;;  %v2632_v34 = vpop.f32.mrb[44].mxu0  ;;  %v2124_v50 = vmax.f32 %v2098_v2, 0.0  ;;  %v4478_v19 = vld [vmem:[#allocation30_spill] sm:$0xff] }
 0x3d4   : > { %v2633_v26 = vpop.f32.mrb[45].mxu0 }
 0x3d5   : > { %v2125_v10 = vmax.f32 %v2101_v9, 0.0  ;;  %v2634_v47 = vadd.f32 %v2633_v26, %v2632_v34  ;;  %v2635_v14 = vpop.f32.mrb[46].mxu0 }
 0x3d6   : > { %v2636_v25 = vpop.f32.mrb[47].mxu0 }
 0x3d7   : > { %v2134_v43 = vpack.c.bf16 %v2125_v10, %v2124_v50  ;;  %v2009_v40 = vadd.f32 %v2634_v47, %v4197_v41  ;;  %v2637_v49 = vadd.f32 %v2636_v25, %v2635_v14  ;;  %v4479_v50 = vld [vmem:[#allocation28_spill] sm:$0xff]  ;;  %v4480_v25 = vld [vmem:[#allocation31_spill] sm:$0xff] }
 0x3d9   : > { %v2106_v32 = vadd.f32 %v4180_v63, %v2009_v40  ;;  %v2012_v5 = vadd.f32 %v2637_v49, %v4197_v41  ;;  %2746 = vmatprep.mubr.msk.bf16.mxu1 %vm1620_vm7, %v2134_v43  ;;  %v4481_v49 = vld [vmem:[#allocation29_spill] sm:$0xff] }
 0x3db   : > { %v2109_v55 = vadd.f32 %v4184_v12, %v2012_v5  ;;  %v2126_v18 = vmax.f32 %v2106_v32, 0.0 }
 0x3dd   : > { %v2127_v37 = vmax.f32 %v2109_v55, 0.0 }
 0x3df   : > { %v2135_v1 = vpack.c.bf16 %v2127_v37, %v2126_v18 }
 0x3e1   : > { %2747 = vmatmul.mubr.msk.bf16.gmra.mrb[32].mxu1 %vm1620_vm7, %v2135_v1 }
 0x484   : > { %v2736_v11 = vpop.f32.mrb[20].mxu1 }
 0x485   : > { %v2226_v63 = vadd.f32 %v2736_v11, %v4242_v4  ;;  %v2217_v41 = vpop.f32.mrb[21].mxu1 }
 0x486   : > { %v2218_v33 = vadd.f32 %v4242_v4, %v2217_v41  ;;  %v2737_v12 = vpop.f32.mrb[22].mxu1  ;;  %v4482_v41 = vld [vmem:[#allocation34_spill] sm:$0xff] }
 0x487   : > { %v2282_v24 = vadd.f32 %v2226_v63, %v4470_v62  ;;  %v2229_v44 = vadd.f32 %v2737_v12, %v4242_v4  ;;  %v2220_v23 = vpop.f32.mrb[23].mxu1 }
 0x488   : > { %v2280_v28 = vadd.f32 %v2218_v33, %v4471_v22  ;;  %v2221_v16 = vadd.f32 %v4242_v4, %v2220_v23 }
 0x489   : > { %v2298_v52 = vmax.f32 %v2282_v24, 0.0  ;;  %v2283_v30 = vadd.f32 %v2229_v44, %v4472_v59  ;;  %v4483_v24 = vld [vmem:[#allocation32_spill] sm:$0xff]  ;;  %v4485_v59 = vld [vmem:[#allocation33_spill] sm:$0xff] }
 0x48a   : > { %v2296_v38 = vmax.f32 %v2280_v28, 0.0  ;;  %v2281_v3 = vadd.f32 %v2221_v16, %v4473_v54  ;;  %v4484_v28 = vld [vmem:[#allocation35_spill] sm:$0xff] }
 0x48b   : > { %2314 = vst [vmem:[%s3343_s25 + $0x10] sm:$0xff] %v2298_v52  ;;  %v2299_v53 = vmax.f32 %v2283_v30, 0.0 }
 0x48c   : > { %2312 = vst [vmem:[%s3343_s25] sm:$0xff] %v2296_v38  ;;  %v2297_v21 = vmax.f32 %v2281_v3, 0.0 }
 0x48d   : > { %2315 = vst [vmem:[%s3343_s25 + $0x18] sm:$0xff] %v2299_v53 }
 0x48e   : > { %2313 = vst [vmem:[%s3343_s25 + $0x8] sm:$0xff] %v2297_v21 }
 0x494   : > { %v2740_v36 = vpop.f32.mrb[24].mxu1 }
 0x495   : > { %v2242_v27 = vadd.f32 %v2740_v36, %v4242_v4  ;;  %v2233_v17 = vpop.f32.mrb[25].mxu1 }
 0x496   : > { %v2234_v15 = vadd.f32 %v4242_v4, %v2233_v17  ;;  %v2741_v35 = vpop.f32.mrb[26].mxu1 }
 0x497   : > { %v2286_v48 = vadd.f32 %v2242_v27, %v4474_v7  ;;  %v2245_v0 = vadd.f32 %v2741_v35, %v4242_v4  ;;  %v2236_v58 = vpop.f32.mrb[27].mxu1 }
 0x498   : > { %v2284_v57 = vadd.f32 %v2234_v15, %v4475_v60  ;;  %v2237_v13 = vadd.f32 %v4242_v4, %v2236_v58 }
 0x499   : > { %v2302_v6 = vmax.f32 %v2286_v48, 0.0  ;;  %v2287_v20 = vadd.f32 %v2245_v0, %v4476_v46 }
 0x49a   : > { %v2300_v39 = vmax.f32 %v2284_v57, 0.0  ;;  %v2285_v29 = vadd.f32 %v2237_v13, %v4477_v31 }
 0x49b   : > { %2318 = vst [vmem:[%s3343_s25 + $0x30] sm:$0xff] %v2302_v6  ;;  %v2303_v42 = vmax.f32 %v2287_v20, 0.0 }
 0x49c   : > { %2316 = vst [vmem:[%s3343_s25 + $0x20] sm:$0xff] %v2300_v39  ;;  %v2301_v61 = vmax.f32 %v2285_v29, 0.0 }
 0x49d   : > { %2319 = vst [vmem:[%s3343_s25 + $0x38] sm:$0xff] %v2303_v42 }
 0x49e   : > { %2317 = vst [vmem:[%s3343_s25 + $0x28] sm:$0xff] %v2301_v61 }
 0x4a4   : > { %v2744_v56 = vpop.f32.mrb[28].mxu1 }
 0x4a5   : > { %v2258_v8 = vadd.f32 %v2744_v56, %v4242_v4  ;;  %v2249_v45 = vpop.f32.mrb[29].mxu1 }
 0x4a6   : > { %v2250_v51 = vadd.f32 %v4242_v4, %v2249_v45  ;;  %v2745_v2 = vpop.f32.mrb[30].mxu1 }
 0x4a7   : > { %v2290_v9 = vadd.f32 %v2258_v8, %v4478_v19  ;;  %v2261_v34 = vadd.f32 %v2745_v2, %v4242_v4  ;;  %v2252_v26 = vpop.f32.mrb[31].mxu1 }
 0x4a8   : > { %v2288_v10 = vadd.f32 %v2250_v51, %v4479_v50  ;;  %v2253_v47 = vadd.f32 %v4242_v4, %v2252_v26 }
 0x4a9   : > { %v2306_v14 = vmax.f32 %v2290_v9, 0.0  ;;  %v2291_v43 = vadd.f32 %v2261_v34, %v4480_v25 }
 0x4aa   : > { %v2304_v40 = vmax.f32 %v2288_v10, 0.0  ;;  %v2289_v32 = vadd.f32 %v2253_v47, %v4481_v49 }
 0x4ab   : > { %2322 = vst [vmem:[%s3343_s25 + $0x50] sm:$0xff] %v2306_v14  ;;  %v2307_v5 = vmax.f32 %v2291_v43, 0.0 }
 0x4ac   : > { %2320 = vst [vmem:[%s3343_s25 + $0x40] sm:$0xff] %v2304_v40  ;;  %v2305_v55 = vmax.f32 %v2289_v32, 0.0 }
 0x4ad   : > { %2323 = vst [vmem:[%s3343_s25 + $0x58] sm:$0xff] %v2307_v5 }
 0x4ae   : > { %2321 = vst [vmem:[%s3343_s25 + $0x48] sm:$0xff] %v2305_v55 }
 0x4b4   : > { %v2748_v18 = vpop.f32.mrb[32].mxu1 }
 0x4b5   : > { %v2274_v37 = vadd.f32 %v2748_v18, %v4242_v4  ;;  %v2265_v1 = vpop.f32.mrb[33].mxu1 }
 0x4b6   : > { %v2266_v11 = vadd.f32 %v4242_v4, %v2265_v1  ;;  %v2749_v63 = vpop.f32.mrb[34].mxu1 }
 0x4b7   : > { %v2294_v33 = vadd.f32 %v2274_v37, %v4482_v41  ;;  %v2277_v12 = vadd.f32 %v2749_v63, %v4242_v4  ;;  %v2268_v62 = vpop.f32.mrb[35].mxu1 }
 0x4b8   : > { %v2292_v44 = vadd.f32 %v2266_v11, %v4483_v24  ;;  %v2269_v23 = vadd.f32 %v4242_v4, %v2268_v62 }
 0x4b9   : > { %v2310_v22 = vmax.f32 %v2294_v33, 0.0  ;;  %v2295_v16 = vadd.f32 %v2277_v12, %v4484_v28 }
 0x4ba   : > { %v2308_v52 = vmax.f32 %v2292_v44, 0.0  ;;  %v2293_v30 = vadd.f32 %v2269_v23, %v4485_v59 }
 0x4bb   : > { %2326 = vst [vmem:[%s3343_s25 + $0x70] sm:$0xff] %v2310_v22  ;;  %v2311_v38 = vmax.f32 %v2295_v16, 0.0 }
 0x4bc   : > { %2324 = vst [vmem:[%s3343_s25 + $0x60] sm:$0xff] %v2308_v52  ;;  %v2309_v54 = vmax.f32 %v2293_v30, 0.0 }
 0x4bd   : > { %2327 = vst [vmem:[%s3343_s25 + $0x78] sm:$0xff] %v2311_v38 }
 0x4be   : > { %2325 = vst [vmem:[%s3343_s25 + $0x68] sm:$0xff] %v2309_v54 }
 0x4bf   : > { %3115 = shalt.err (!%p3112_p12)
}
 0x4c0   : > { %s3116_s25 = scalar_lea.hbm %s4298_s27, 2048  ;;  %s3120_s20 = scalar_lea.hbm %s4364_s8, 8192 }
 0x4c1   : > { %p3117_p13 = scmp.ne.s32.totalorder %s4298_s27, %s3116_s25  ;;  %p3121_p2 = scmp.lt.u32.totalorder %s4298_s27, %s4364_s8 }
 0x4c2   : > { %p3122_p4 = scmp.lt.u32.totalorder %s3120_s20, %s3116_s25  ;;  %p3124_p6 = scmp.lt.u32.totalorder %s3116_s25, %s4298_s27 }
 0x4c3   : > { %p3118_p0 = pnand %p3117_p13, %p3304_p3 }
 0x4c4   : > { %p3123_p5 = por %p3122_p4, %p3121_p2 }
 0x4c5   : > { %p3119_p1 = pneg %p3118_p0 }
 0x4c6   : > { %p3125_p7 = por %p3124_p6, %p3123_p5 }
 0x4c8   : > { %p3126_p9 = pnand %p3125_p7, %p3119_p1 }
 0x4ca   : > { %3129 = shalt.err (!%p3126_p9)
}
 0x4cb   : > { %s3206_s14 = smov 128   ;;  %s3207_s10 = smov 8  }
 0x4cc   : > { %2750 = dma.vmem_to_hbm [thread:$0]  (%p3304_p3), %s4292_s30, 2048, %s4298_s27, %s4304_s24, %s3206_s14, %s3206_s14, %s3207_s10  }
 0x4cd PF: > { %s4487_s11 = sld [smem:[#allocation15_spill]]  ;;  %s4488_s9 = sld [smem:[#allocation11_spill]] }
 0x4d3   : > { %p2756_p10 = scmp.ge.s32.totalorder %s4487_s11, 2  ;;  %s2360_s17 = sand.u32 1, %s4488_s9  }
 0x4d4   : > { %s2361_s12 = scalar_lea.sflag [#allocation5], %s2360_s17 }
 0x4d5   : > { %p2753_p11 = pnand %p2756_p10, %p3313_p8 }
 0x4d7   : > { %3167 = dma.done.wait (!%p2753_p11), %s2361_s12, 2048  }
 0x4d8   : > { %3169 = vsyncadd (!%p2753_p11), %s2361_s12, 4294965248  ;;  %s21_s12 = sadd.s32 1, %s4487_s11   ;;  %s4490_s29 = sld [smem:[#allocation12_spill]] }
 0x4d9   : > { %p18_p12 = scmp.ge.s32.totalorder %s21_s12, 6   ;;  %s4491_s23 = sld [smem:[#allocation19_spill]] }
 0x4da   : > { %s4492_s30 = sld [smem:[#allocation13_spill]]  ;;  %s4493_s9 = sld [smem:[#allocation14_spill]] }
 0x4db   : > { %s4494_s10 = sld [smem:[#allocation16_spill]]  ;;  %s4495_s11 = sld [smem:[#allocation17_spill]] }
 0x4dc   : > { %s4496_s27 = smov %s3176_s28  ;;  %20 = sbr.rel (!%p18_p12) target bundleno = 5 (0x5), region = 172 }
 0x4de   : > { %s4497_s28 = smov %s4490_s29 }
 0x4df   : > { %s4498_s29 = smov %s4491_s23 }
 0x4e3   :  { %2366 = vsyncpa [#allocation5], 1 }
 0x4e4   :  { %2368 = vsyncpa [#allocation5 + $0x1], 1 }
 0x4e5   :  { %2369 = vsyncmov [#allocation3] }
 0x4e8   :  { %s2370_s18 = vpop.sfrf %2369 }
 0x4e9   :  { %p2545_p3 = scmp.ne.s32.totalorder %s2370_s18, 0 }
 0x4eb   :  { %2374 = shalt.err (%p2545_p3)  }
 0x4ec   :  { %2376 = vsyncmov [#allocation3 + $0x1] }
 0x4ef   :  { %s2377_s24 = vpop.sfrf %2376 }
 0x4f0   :  { %p2546_p8 = scmp.ne.s32.totalorder %s2377_s24, 0 }
 0x4f2   :  { %2381 = shalt.err (%p2546_p8)  }

</bundles_post_ra>
